<compile_context>
chip_gen: v6e
topology: v6e:2x2x1
jax: 0.10.0
libtpu: 0.0.40
codegen_flags: <defaults>
</compile_context>

<pallas_src>
import functools

import jax
import jax.numpy as jnp
from jax.experimental import pallas as pl
from jax.experimental.pallas import tpu as pltpu

ATTN_EPS = 1e-5
LN_EPS = 1e-5


def _layer_norm(z, gamma, beta):
    mu = jnp.mean(z, axis=-1, keepdims=True)
    var = jnp.mean((z - mu) ** 2, axis=-1, keepdims=True)
    return (z - mu) * jax.lax.rsqrt(var + LN_EPS) * gamma + beta


def transformer_kernel(x_ref, wqk_ref, uvec_ref, w1_ref, bf1_ref, w2_ref,
                       cvec_ref, ba_ref, o_ref, *scratch,
                       mxu_dtype, attn_dtype, q_chunk, lane_dense, approx_recip):
    Bb, C, T = x_ref.shape
    U = uvec_ref.shape[1]

    # ---- NCT -> NTC: one batched relayout on VMEM-resident data ----
    x_btc = jnp.swapaxes(x_ref[...], 1, 2)                 # (Bb, T, C)
    x2 = x_btc.reshape(Bb * T, C)                          # f32 residual slab
    xm = x2.astype(mxu_dtype)                              # single cast, reused for all matmuls
    x3m = xm.reshape(Bb, T, C)

    # ---- fused q/k projection: one MXU push with N = 2U ----
    qk = jnp.dot(xm, wqk_ref[...].astype(mxu_dtype),
                 preferred_element_type=jnp.float32)       # (Bb*T, 2U)
    bh = uvec_ref[0:1, :]                                  # (1, U)
    wa = uvec_ref[1:2, :]                                  # (1, U)
    ba = ba_ref[0]                                         # scalar in SMEM
    # bh hoisted out of the (T, T, U) broadcast (added once to q).
    q3 = (qk[:, :U] + bh).reshape(Bb, T, U).astype(attn_dtype)
    k3 = qk[:, U:].reshape(Bb, T, U).astype(attn_dtype)
    wa_a = wa.astype(attn_dtype)
    # lane-dense layout for large T: keys on the lane axis.
    k_b = jnp.swapaxes(k3, 1, 2) if lane_dense else k3     # (Bb, U, T) or (Bb, T, U)

    def attend(q_c):
        # q_c: (Bb, tq, U) -> v_c: (Bb, tq, C) f32
        if lane_dense:
            h = jnp.tanh(q_c[:, :, :, None] + k_b[:, None, :, :])            # (Bb,tq,U,Tk)
            e = jnp.sum((h * wa_a.reshape(1, 1, U, 1)).astype(jnp.float32),
                        axis=2) + ba                                          # (Bb,tq,Tk)
        else:
            h = jnp.tanh(q_c[:, :, None, :] + k_b[:, None, :, :])            # (Bb,tq,Tk,U)
            e = jnp.sum((h * wa_a.reshape(1, 1, 1, U)).astype(jnp.float32),
                        axis=-1) + ba                                         # (Bb,tq,Tk)
        e = jnp.exp(e - jnp.max(e, axis=-1, keepdims=True))
        den = jnp.sum(e, axis=-1, keepdims=True) + ATTN_EPS
        if approx_recip:
            a = e * pl.reciprocal(den, approx=True)
        else:
            a = e / den
        return jnp.einsum("bij,bjc->bic", a.astype(mxu_dtype), x3m,
                          preferred_element_type=jnp.float32)

    if q_chunk >= T:
        v2 = attend(q3).reshape(Bb * T, C)
    else:
        # query-axis chunking bounds the (tq, T, U) attention temporary.
        q_scr, v_scr = scratch
        q_scr[...] = q3

        def body(ci, carry):
            start = ci * q_chunk
            if q_chunk % 8 == 0:
                start = pl.multiple_of(start, 8)
            v_scr[:, pl.ds(start, q_chunk), :] = attend(
                q_scr[:, pl.ds(start, q_chunk), :])
            return carry

        jax.lax.fori_loop(0, T // q_chunk, body, 0)
        v2 = v_scr[...].reshape(Bb * T, C)

    # ---- residual + norm1 ----
    g1 = cvec_ref[0:1, :]
    b1 = cvec_ref[1:2, :]
    g2 = cvec_ref[2:3, :]
    b2 = cvec_ref[3:4, :]
    bf2 = cvec_ref[4:5, :]
    y = _layer_norm(x2 + v2, g1, b1)                       # (Bb*T, C)

    # ---- pointwise feed-forward (dropout = identity at inference) ----
    hdn = jnp.dot(y.astype(mxu_dtype), w1_ref[...].astype(mxu_dtype),
                  preferred_element_type=jnp.float32) + bf1_ref[...]
    hdn = jnp.maximum(hdn, 0.0)
    ff = jnp.dot(hdn.astype(mxu_dtype), w2_ref[...].astype(mxu_dtype),
                 preferred_element_type=jnp.float32) + bf2

    # ---- residual + norm2, back to NCT with one batched relayout ----
    out = _layer_norm(y + ff, g2, b2)                      # (Bb*T, C)
    o_ref[...] = jnp.swapaxes(out.reshape(Bb, T, C), 1, 2)


# ------------------------- tiling / VMEM policy -------------------------

def _round_up(x, m):
    return (x + m - 1) // m * m


def _vmem_capacity_bytes():
    try:
        cap = getattr(pltpu.get_tpu_info(), "vmem_capacity_bytes", None)
        if cap:
            return int(cap)
    except Exception:
        pass
    return 128 * 1024 * 1024


def _footprint_bytes(bb, q_chunk, C, T, H, U, attn_itemsize, lane_dense):
    """Rough per-grid-step VMEM footprint: I/O double-buffers, weights, temporaries."""
    f32 = 4
    row8 = _round_up(T, 8)
    io = 2 * 2 * bb * _round_up(C, 8) * _round_up(T, 128) * f32          # x / out blocks, 2-buffered
    slabs = 5 * bb * row8 * _round_up(C, 128) * f32                      # x2 / xm / v / y / out
    qk = (2 * bb * row8 * _round_up(2 * U, 128) * f32
          + 2 * bb * row8 * _round_up(U, 128) * attn_itemsize)           # projections + attn copies
    ffn = 2 * bb * row8 * _round_up(H, 128) * f32                        # hidden + relu
    w = 2 * (_round_up(C, 8) * _round_up(2 * U, 128)
             + _round_up(C, 8) * _round_up(H, 128)
             + _round_up(H, 8) * _round_up(C, 128)) * f32                # double-buffered weights
    if lane_dense:
        h = bb * q_chunk * _round_up(U, 8) * _round_up(T, 128)
    else:
        h = bb * q_chunk * _round_up(T, 8) * _round_up(U, 128)
    attn = 3 * h * attn_itemsize + 2 * bb * _round_up(q_chunk, 8) * _round_up(T, 128) * f32
    scr = 0
    if q_chunk < T:
        scr = bb * row8 * (_round_up(U, 128) * attn_itemsize + _round_up(C, 128) * f32)
    return io + slabs + qk + ffn + w + attn + scr


def _choose_tiling(B, C, T, H, U, attn_itemsize, batch_block, q_chunk, budget,
                   min_grid_steps):
    lane_dense = (T >= 128) and (U < T)
    bb_cap = max(1, min(batch_block, B))
    if min_grid_steps > 1 and B >= min_grid_steps:
        bb_cap = max(1, min(bb_cap, B // min_grid_steps))

    if q_chunk is not None:
        qc0 = min(q_chunk, T)
        if T % qc0 != 0:
            raise ValueError(f"q_chunk={q_chunk} must divide T={T}")
        q_cands = [qc0]
    else:
        q_cands = sorted({d for d in range(1, T + 1)
                          if T % d == 0 and (d == T or d % 8 == 0)}, reverse=True)

    for bb in range(bb_cap, 0, -1):      # prefer biggest batch block (matmul M)
        if B % bb:
            continue
        for qc in q_cands:               # then biggest q-chunk that fits
            if _footprint_bytes(bb, qc, C, T, H, U, attn_itemsize, lane_dense) <= budget:
                return bb, qc, lane_dense
    # TODO(synk): implement key-axis online-softmax tiling for shapes that reach here.
    raise ValueError("Transformer block exceeds the VMEM budget even at batch block 1 "
                     "and the smallest query chunk; key-axis tiling is required.")


# ------------------------------- wrapper --------------------------------

def transformer_forward(x_nct, params, *, batch_block=8, mxu_dtype=jnp.bfloat16,
                        attn_dtype=None, q_chunk=None):
    """x_nct: (B, C, T) float32.  Returns (B, C, T) float32."""
    B, C, T = x_nct.shape
    U = params["Wt"].shape[1]
    H = params["W1"].shape[1]
    if attn_dtype is None:
        attn_dtype = mxu_dtype          # f32 recommended on v5e (no bf16 VPU/EUP)
    attn_itemsize = jnp.dtype(attn_dtype).itemsize

    vmem_cap = _vmem_capacity_bytes()
    budget = min((vmem_cap * 3) // 4, 100 * 1024 * 1024)   # ~96 MiB v5e/v6e, ~48 MiB v7x
    min_grid_steps = 2 if vmem_cap <= 64 * 1024 * 1024 else 1  # keep both v7x TCs busy

    bb, qc, lane_dense = _choose_tiling(B, C, T, H, U, attn_itemsize,
                                        batch_block, q_chunk, budget, min_grid_steps)

    # Consolidated parameter tiles; ba goes to SMEM.
    wqk = jnp.concatenate([params["Wt"], params["Wx"]], axis=1).astype(jnp.float32)   # (C, 2U)
    uvec = jnp.stack([params["bh"], params["Wa"].reshape(U)]).astype(jnp.float32)     # (2, U)
    cvec = jnp.stack([params["g1"], params["b1"], params["g2"], params["b2"],
                      params["bf2"]]).astype(jnp.float32)                             # (5, C)
    w1 = params["W1"].astype(jnp.float32)                                             # (C, H)
    bf1 = params["bf1"].reshape(1, H).astype(jnp.float32)                             # (1, H)
    w2 = params["W2"].astype(jnp.float32)                                             # (H, C)
    ba = params["ba"].reshape(1).astype(jnp.float32)                                  # (1,) -> SMEM

    loose = (mxu_dtype == jnp.bfloat16) or (attn_dtype == jnp.bfloat16)
    kernel = functools.partial(transformer_kernel, mxu_dtype=mxu_dtype,
                               attn_dtype=attn_dtype, q_chunk=qc,
                               lane_dense=lane_dense, approx_recip=loose)

    scratch_shapes = []
    if qc < T:
        scratch_shapes = [pltpu.VMEM((bb, T, U), attn_dtype),
                          pltpu.VMEM((bb, T, C), jnp.float32)]

    y = pl.pallas_call(
        kernel,
        out_shape=jax.ShapeDtypeStruct((B, C, T), jnp.float32),
        grid_spec=pltpu.PrefetchScalarGridSpec(
            num_scalar_prefetch=0,
            grid=(B // bb,),
            in_specs=[
                pl.BlockSpec((bb, C, T), lambda i: (i, 0, 0)),      # x (NCT block)
                pl.BlockSpec((C, 2 * U), lambda i: (0, 0)),         # [Wt | Wx]
                pl.BlockSpec((2, U), lambda i: (0, 0)),             # [bh; Wa]
                pl.BlockSpec((C, H), lambda i: (0, 0)),             # W1
                pl.BlockSpec((1, H), lambda i: (0, 0)),             # bf1
                pl.BlockSpec((H, C), lambda i: (0, 0)),             # W2
                pl.BlockSpec((5, C), lambda i: (0, 0)),             # [g1; b1; g2; b2; bf2]
                pl.BlockSpec(memory_space=pltpu.MemorySpace.SMEM),  # ba (scalar)
            ],
            out_specs=pl.BlockSpec((bb, C, T), lambda i: (i, 0, 0)),
            scratch_shapes=scratch_shapes,
        ),
        compiler_params=pltpu.CompilerParams(
            dimension_semantics=("parallel",),
            vmem_limit_bytes=int(budget),
        ),
    )(x_nct.astype(jnp.float32), wqk, uvec, w1, bf1, w2, cvec, ba)
    return y


# ------------------------------ reference -------------------------------

def reference_forward(x_nct, params):
    """Pure-JAX reference mirroring the PyTorch forward (eval mode)."""
    xt = jnp.transpose(x_nct, (0, 2, 1))                     # (B, T, C)
    q = xt @ params["Wt"]
    k = xt @ params["Wx"]
    h = jnp.tanh(q[:, :, None, :] + k[:, None, :, :] + params["bh"])
    e = jnp.squeeze(h @ params["Wa"], -1) + params["ba"]     # (B, T, T)
    e = e - jnp.max(e, axis=-1, keepdims=True)
    e = jnp.exp(e)
    a = e / (jnp.sum(e, axis=-1, keepdims=True) + ATTN_EPS)
    v = a @ xt                                               # (B, T, C)
    y = _layer_norm(xt + v, params["g1"], params["b1"])
    hdn = jnp.maximum(y @ params["W1"] + params["bf1"], 0.0)
    ff = hdn @ params["W2"] + params["bf2"]
    y2 = _layer_norm(y + ff, params["g2"], params["b2"])
    return jnp.transpose(y2, (0, 2, 1))


def init_params(key, input_size, units=32, hidden=None):
    if hidden is None:
        hidden = 4 * input_size
    ks = jax.random.split(key, 5)
    u = lambda k, shape: jax.random.uniform(k, shape, jnp.float32, -0.02, 0.02)
    return {
        "Wt": u(ks[0], (input_size, units)),
        "Wx": u(ks[1], (input_size, units)),
        "bh": jnp.zeros((units,), jnp.float32),
        "Wa": u(ks[2], (units, 1)),
        "ba": jnp.zeros((1,), jnp.float32),
        "g1": jnp.ones((input_size,), jnp.float32),
        "b1": jnp.zeros((input_size,), jnp.float32),
        "g2": jnp.ones((input_size,), jnp.float32),
        "b2": jnp.zeros((input_size,), jnp.float32),
        "W1": u(ks[3], (input_size, hidden)) * 5.0,
        "bf1": jnp.zeros((hidden,), jnp.float32),
        "W2": u(ks[4], (hidden, input_size)) * 5.0,
        "bf2": jnp.zeros((input_size,), jnp.float32),
    }


if __name__ == "__main__":
    key = jax.random.PRNGKey(0)
    k_x, k_p, k_x2 = jax.random.split(key, 3)

    # ---- small NCT test: (batch, input_size, T) like the PyTorch module ----
    B, C, T = 4, 32, 8
    x = jax.random.normal(k_x, (B, C, T), jnp.float32)
    params = init_params(k_p, C)
    ref = reference_forward(x, params)

    # exact f32 path (strict check; also the v5e-safe configuration)
    out = jax.block_until_ready(
        transformer_forward(x, params, batch_block=2, mxu_dtype=jnp.float32))
    assert out.shape == (B, C, T)
    assert jnp.allclose(out, ref, atol=5e-5, rtol=5e-5), \
        f"f32 max abs err {jnp.max(jnp.abs(out - ref))}"

    # default bf16 MXU/VPU path (v6e/v7x oriented); softmax/LN accumulate in f32.
    out_bf16 = jax.block_until_ready(transformer_forward(x, params, batch_block=2))
    assert jnp.all(jnp.isfinite(out_bf16))
    assert jnp.allclose(out_bf16, ref, atol=1e-1, rtol=1e-1), \
        f"bf16 max abs err {jnp.max(jnp.abs(out_bf16 - ref))}"

    # ---- larger-T test: exercises the lane-dense attention layout (f32, exact) ----
    B2, C2, T2 = 2, 32, 128
    x2 = jax.random.normal(k_x2, (B2, C2, T2), jnp.float32)
    params2 = init_params(jax.random.PRNGKey(1), C2)
    ref2 = reference_forward(x2, params2)
    out2 = jax.block_until_ready(
        transformer_forward(x2, params2, mxu_dtype=jnp.float32))
    assert jnp.allclose(out2, ref2, atol=1e-4, rtol=1e-4), \
        f"lane-dense f32 max abs err {jnp.max(jnp.abs(out2 - ref2))}"

    # same shape with forced query-axis chunking (2 chunks of 64) -- exact path.
    out2c = jax.block_until_ready(
        transformer_forward(x2, params2, mxu_dtype=jnp.float32, q_chunk=64))
    assert jnp.allclose(out2c, ref2, atol=1e-4, rtol=1e-4), \
        f"q-chunked f32 max abs err {jnp.max(jnp.abs(out2c - ref2))}"

    print("KERNEL_OK")
</pallas_src>

<mosaic_0001>
module attributes {stable_mosaic.version = 11 : i64} {
  func.func @transformer_kernel(%arg0: i32, %arg1: memref<2x32x8xf32, #tpu.memory_space<vmem>>, %arg2: memref<32x64xf32, #tpu.memory_space<vmem>>, %arg3: memref<2x32xf32, #tpu.memory_space<vmem>>, %arg4: memref<32x128xf32, #tpu.memory_space<vmem>>, %arg5: memref<1x128xf32, #tpu.memory_space<vmem>>, %arg6: memref<128x32xf32, #tpu.memory_space<vmem>>, %arg7: memref<5x32xf32, #tpu.memory_space<vmem>>, %arg8: memref<1xf32, #tpu.memory_space<smem>>, %arg9: memref<2x32x8xf32, #tpu.memory_space<vmem>>) attributes {dimension_semantics = [#tpu.dimension_semantics<parallel>], iteration_bounds = array<i64: 2>, scalar_prefetch = 0 : i64, scratch_operands = 0 : i64, tpu.core_type = #tpu.core_type<tc>, window_params = [{transform_indices = @transform_0, window_bounds = array<i64: 2, 32, 8>}, {pipeline_mode = #tpu.pipeline_mode<synchronous>, transform_indices = @transform_1, window_bounds = array<i64: 32, 64>}, {pipeline_mode = #tpu.pipeline_mode<synchronous>, transform_indices = @transform_2, window_bounds = array<i64: 2, 32>}, {pipeline_mode = #tpu.pipeline_mode<synchronous>, transform_indices = @transform_3, window_bounds = array<i64: 32, 128>}, {pipeline_mode = #tpu.pipeline_mode<synchronous>, transform_indices = @transform_4, window_bounds = array<i64: 1, 128>}, {pipeline_mode = #tpu.pipeline_mode<synchronous>, transform_indices = @transform_5, window_bounds = array<i64: 128, 32>}, {pipeline_mode = #tpu.pipeline_mode<synchronous>, transform_indices = @transform_6, window_bounds = array<i64: 5, 32>}, {transform_indices = @transform_7, window_bounds = array<i64: 1>}, {transform_indices = @transform_8, window_bounds = array<i64: 2, 32, 8>}]} {
    %c0 = arith.constant 0 : index
    %c0_0 = arith.constant 0 : index
    %c0_1 = arith.constant 0 : index
    %0 = vector.load %arg1[%c0, %c0_0, %c0_1] : memref<2x32x8xf32, #tpu.memory_space<vmem>>, vector<2x32x8xf32>
    %1 = tpu.transpose %0, [0, 2, 1] : vector<2x32x8xf32> -> vector<2x8x32xf32>
    %2 = vector.shape_cast %1 : vector<2x8x32xf32> to vector<16x32xf32>
    %3 = vector.shape_cast %2 : vector<16x32xf32> to vector<2x8x32xf32>
    %c0_2 = arith.constant 0 : index
    %c0_3 = arith.constant 0 : index
    %4 = vector.load %arg2[%c0_2, %c0_3] : memref<32x64xf32, #tpu.memory_space<vmem>>, vector<32x64xf32>
    %cst = arith.constant dense<0.000000e+00> : vector<16x64xf32>
    %5 = tpu.matmul %2, %4, %cst {dimension_numbers = #tpu.dot_dimension_numbers<[1], [0], [0], [1], [0, 0, 1, 1], [], []>} : vector<16x32xf32>, vector<32x64xf32>, vector<16x64xf32> -> vector<16x64xf32>
    %c0_4 = arith.constant 0 : index
    %c0_5 = arith.constant 0 : index
    %6 = vector.load %arg3[%c0_4, %c0_5] : memref<2x32xf32, #tpu.memory_space<vmem>>, vector<1x32xf32>
    %c1 = arith.constant 1 : index
    %c0_6 = arith.constant 0 : index
    %7 = vector.load %arg3[%c1, %c0_6] : memref<2x32xf32, #tpu.memory_space<vmem>>, vector<1x32xf32>
    %c0_7 = arith.constant 0 : index
    %8 = memref.load %arg8[%c0_7] : memref<1xf32, #tpu.memory_space<smem>>
    %9 = vector.extract_strided_slice %5 {offsets = [0, 0], sizes = [16, 32], strides = [1, 1]} : vector<16x64xf32> to vector<16x32xf32>
    %10 = vector.broadcast %6 : vector<1x32xf32> to vector<16x32xf32>
    %11 = arith.addf %9, %10 : vector<16x32xf32>
    %12 = vector.shape_cast %11 : vector<16x32xf32> to vector<2x8x32xf32>
    %13 = vector.extract_strided_slice %5 {offsets = [0, 32], sizes = [16, 32], strides = [1, 1]} : vector<16x64xf32> to vector<16x32xf32>
    %14 = vector.shape_cast %13 : vector<16x32xf32> to vector<2x8x32xf32>
    %15 = vector.shape_cast %12 : vector<2x8x32xf32> to vector<2x8x1x32xf32>
    %16 = vector.shape_cast %14 : vector<2x8x32xf32> to vector<2x1x8x32xf32>
    %17 = vector.broadcast %15 : vector<2x8x1x32xf32> to vector<2x8x8x32xf32>
    %18 = vector.broadcast %16 : vector<2x1x8x32xf32> to vector<2x8x8x32xf32>
    %19 = arith.addf %17, %18 : vector<2x8x8x32xf32>
    %20 = math.tanh %19 : vector<2x8x8x32xf32>
    %21 = vector.shape_cast %7 : vector<1x32xf32> to vector<1x1x1x32xf32>
    %22 = vector.broadcast %21 : vector<1x1x1x32xf32> to vector<2x8x8x32xf32>
    %23 = arith.mulf %20, %22 : vector<2x8x8x32xf32>
    %cst_8 = arith.constant dense<0.000000e+00> : vector<2x8x8xf32>
    %24 = vector.multi_reduction <add>, %23, %cst_8 [3] : vector<2x8x8x32xf32> to vector<2x8x8xf32>
    %25 = vector.broadcast %8 : f32 to vector<2x8x8xf32>
    %26 = arith.addf %24, %25 : vector<2x8x8xf32>
    %cst_9 = arith.constant dense<0xFF800000> : vector<2x8xf32>
    %27 = vector.multi_reduction <maximumf>, %26, %cst_9 [2] : vector<2x8x8xf32> to vector<2x8xf32>
    %28 = vector.shape_cast %27 : vector<2x8xf32> to vector<2x8x1xf32>
    %29 = vector.broadcast %28 : vector<2x8x1xf32> to vector<2x8x8xf32>
    %30 = arith.subf %26, %29 : vector<2x8x8xf32>
    %31 = math.exp %30 : vector<2x8x8xf32>
    %cst_10 = arith.constant dense<0.000000e+00> : vector<2x8xf32>
    %32 = vector.multi_reduction <add>, %31, %cst_10 [2] : vector<2x8x8xf32> to vector<2x8xf32>
    %33 = vector.shape_cast %32 : vector<2x8xf32> to vector<2x8x1xf32>
    %cst_11 = arith.constant 9.99999974E-6 : f32
    %34 = vector.broadcast %cst_11 : f32 to vector<2x8x1xf32>
    %35 = arith.addf %33, %34 : vector<2x8x1xf32>
    %36 = vector.broadcast %35 : vector<2x8x1xf32> to vector<2x8x8xf32>
    %37 = arith.divf %31, %36 : vector<2x8x8xf32>
    "tpu.trace_start"() <{level = 10 : i32, message = "bij,bjc->bic"}> : () -> ()
    %cst_12 = arith.constant dense<0.000000e+00> : vector<2x8x32xf32>
    %38 = tpu.matmul %37, %3, %cst_12 {dimension_numbers = #tpu.dot_dimension_numbers<[2], [1], [1], [2], [0, 0, 0, 1, 1, 2], [0], [0]>} : vector<2x8x8xf32>, vector<2x8x32xf32>, vector<2x8x32xf32> -> vector<2x8x32xf32>
    "tpu.trace_stop"() : () -> ()
    %39 = vector.shape_cast %38 : vector<2x8x32xf32> to vector<16x32xf32>
    %c0_13 = arith.constant 0 : index
    %c0_14 = arith.constant 0 : index
    %40 = vector.load %arg7[%c0_13, %c0_14] : memref<5x32xf32, #tpu.memory_space<vmem>>, vector<1x32xf32>
    %c1_15 = arith.constant 1 : index
    %c0_16 = arith.constant 0 : index
    %41 = vector.load %arg7[%c1_15, %c0_16] : memref<5x32xf32, #tpu.memory_space<vmem>>, vector<1x32xf32>
    %c2 = arith.constant 2 : index
    %c0_17 = arith.constant 0 : index
    %42 = vector.load %arg7[%c2, %c0_17] : memref<5x32xf32, #tpu.memory_space<vmem>>, vector<1x32xf32>
    %c3 = arith.constant 3 : index
    %c0_18 = arith.constant 0 : index
    %43 = vector.load %arg7[%c3, %c0_18] : memref<5x32xf32, #tpu.memory_space<vmem>>, vector<1x32xf32>
    %c4 = arith.constant 4 : index
    %c0_19 = arith.constant 0 : index
    %44 = vector.load %arg7[%c4, %c0_19] : memref<5x32xf32, #tpu.memory_space<vmem>>, vector<1x32xf32>
    %45 = arith.addf %2, %39 : vector<16x32xf32>
    %cst_20 = arith.constant dense<0.000000e+00> : vector<16xf32>
    %46 = vector.multi_reduction <add>, %45, %cst_20 [1] : vector<16x32xf32> to vector<16xf32>
    %47 = vector.shape_cast %46 : vector<16xf32> to vector<16x1xf32>
    %cst_21 = arith.constant 3.200000e+01 : f32
    %48 = vector.broadcast %cst_21 : f32 to vector<16x1xf32>
    %49 = arith.divf %47, %48 : vector<16x1xf32>
    %50 = vector.broadcast %49 : vector<16x1xf32> to vector<16x32xf32>
    %51 = arith.subf %45, %50 : vector<16x32xf32>
    %52 = arith.mulf %51, %51 : vector<16x32xf32>
    %cst_22 = arith.constant dense<0.000000e+00> : vector<16xf32>
    %53 = vector.multi_reduction <add>, %52, %cst_22 [1] : vector<16x32xf32> to vector<16xf32>
    %54 = vector.shape_cast %53 : vector<16xf32> to vector<16x1xf32>
    %cst_23 = arith.constant 3.200000e+01 : f32
    %55 = vector.broadcast %cst_23 : f32 to vector<16x1xf32>
    %56 = arith.divf %54, %55 : vector<16x1xf32>
    %57 = vector.broadcast %49 : vector<16x1xf32> to vector<16x32xf32>
    %58 = arith.subf %45, %57 : vector<16x32xf32>
    %cst_24 = arith.constant 9.99999974E-6 : f32
    %59 = vector.broadcast %cst_24 : f32 to vector<16x1xf32>
    %60 = arith.addf %56, %59 : vector<16x1xf32>
    %61 = math.rsqrt %60 : vector<16x1xf32>
    %62 = vector.broadcast %61 : vector<16x1xf32> to vector<16x32xf32>
    %63 = arith.mulf %58, %62 : vector<16x32xf32>
    %64 = vector.broadcast %40 : vector<1x32xf32> to vector<16x32xf32>
    %65 = arith.mulf %63, %64 : vector<16x32xf32>
    %66 = vector.broadcast %41 : vector<1x32xf32> to vector<16x32xf32>
    %67 = arith.addf %65, %66 : vector<16x32xf32>
    %c0_25 = arith.constant 0 : index
    %c0_26 = arith.constant 0 : index
    %68 = vector.load %arg4[%c0_25, %c0_26] : memref<32x128xf32, #tpu.memory_space<vmem>>, vector<32x128xf32>
    %cst_27 = arith.constant dense<0.000000e+00> : vector<16x128xf32>
    %69 = tpu.matmul %67, %68, %cst_27 {dimension_numbers = #tpu.dot_dimension_numbers<[1], [0], [0], [1], [0, 0, 1, 1], [], []>} : vector<16x32xf32>, vector<32x128xf32>, vector<16x128xf32> -> vector<16x128xf32>
    %c0_28 = arith.constant 0 : index
    %c0_29 = arith.constant 0 : index
    %70 = vector.load %arg5[%c0_28, %c0_29] : memref<1x128xf32, #tpu.memory_space<vmem>>, vector<1x128xf32>
    %71 = vector.broadcast %70 : vector<1x128xf32> to vector<16x128xf32>
    %72 = arith.addf %69, %71 : vector<16x128xf32>
    %cst_30 = arith.constant 0.000000e+00 : f32
    %73 = vector.broadcast %cst_30 : f32 to vector<16x128xf32>
    %74 = arith.maximumf %72, %73 : vector<16x128xf32>
    %c0_31 = arith.constant 0 : index
    %c0_32 = arith.constant 0 : index
    %75 = vector.load %arg6[%c0_31, %c0_32] : memref<128x32xf32, #tpu.memory_space<vmem>>, vector<128x32xf32>
    %cst_33 = arith.constant dense<0.000000e+00> : vector<16x32xf32>
    %76 = tpu.matmul %74, %75, %cst_33 {dimension_numbers = #tpu.dot_dimension_numbers<[1], [0], [0], [1], [0, 0, 1, 1], [], []>} : vector<16x128xf32>, vector<128x32xf32>, vector<16x32xf32> -> vector<16x32xf32>
    %77 = vector.broadcast %44 : vector<1x32xf32> to vector<16x32xf32>
    %78 = arith.addf %76, %77 : vector<16x32xf32>
    %79 = arith.addf %67, %78 : vector<16x32xf32>
    %cst_34 = arith.constant dense<0.000000e+00> : vector<16xf32>
    %80 = vector.multi_reduction <add>, %79, %cst_34 [1] : vector<16x32xf32> to vector<16xf32>
    %81 = vector.shape_cast %80 : vector<16xf32> to vector<16x1xf32>
    %cst_35 = arith.constant 3.200000e+01 : f32
    %82 = vector.broadcast %cst_35 : f32 to vector<16x1xf32>
    %83 = arith.divf %81, %82 : vector<16x1xf32>
    %84 = vector.broadcast %83 : vector<16x1xf32> to vector<16x32xf32>
    %85 = arith.subf %79, %84 : vector<16x32xf32>
    %86 = arith.mulf %85, %85 : vector<16x32xf32>
    %cst_36 = arith.constant dense<0.000000e+00> : vector<16xf32>
    %87 = vector.multi_reduction <add>, %86, %cst_36 [1] : vector<16x32xf32> to vector<16xf32>
    %88 = vector.shape_cast %87 : vector<16xf32> to vector<16x1xf32>
    %cst_37 = arith.constant 3.200000e+01 : f32
    %89 = vector.broadcast %cst_37 : f32 to vector<16x1xf32>
    %90 = arith.divf %88, %89 : vector<16x1xf32>
    %91 = vector.broadcast %83 : vector<16x1xf32> to vector<16x32xf32>
    %92 = arith.subf %79, %91 : vector<16x32xf32>
    %cst_38 = arith.constant 9.99999974E-6 : f32
    %93 = vector.broadcast %cst_38 : f32 to vector<16x1xf32>
    %94 = arith.addf %90, %93 : vector<16x1xf32>
    %95 = math.rsqrt %94 : vector<16x1xf32>
    %96 = vector.broadcast %95 : vector<16x1xf32> to vector<16x32xf32>
    %97 = arith.mulf %92, %96 : vector<16x32xf32>
    %98 = vector.broadcast %42 : vector<1x32xf32> to vector<16x32xf32>
    %99 = arith.mulf %97, %98 : vector<16x32xf32>
    %100 = vector.broadcast %43 : vector<1x32xf32> to vector<16x32xf32>
    %101 = arith.addf %99, %100 : vector<16x32xf32>
    %102 = vector.shape_cast %101 : vector<16x32xf32> to vector<2x8x32xf32>
    %103 = tpu.transpose %102, [0, 2, 1] : vector<2x8x32xf32> -> vector<2x32x8xf32>
    %c0_39 = arith.constant 0 : index
    %c0_40 = arith.constant 0 : index
    %c0_41 = arith.constant 0 : index
    %104 = vector.load %arg9[%c0_39, %c0_40, %c0_41] : memref<2x32x8xf32, #tpu.memory_space<vmem>>, vector<2x32x8xf32>
    tpu.vector_store %arg9[%c0_39, %c0_40, %c0_41], %103 {strides = array<i32>} : memref<2x32x8xf32, #tpu.memory_space<vmem>>, vector<2x32x8xf32>,
    return
  }
  func.func @transform_0(%arg0: i32) -> (i32, i32, i32) {
    %c0_i32 = arith.constant 0 : i32
    %c0_i32_0 = arith.constant 0 : i32
    %c0_i32_1 = arith.constant 0 : i32
    return %arg0, %c0_i32, %c0_i32_0 : i32, i32, i32
  }
  func.func @transform_1(%arg0: i32) -> (i32, i32) {
    %c0_i32 = arith.constant 0 : i32
    %c0_i32_0 = arith.constant 0 : i32
    %c0_i32_1 = arith.constant 0 : i32
    return %c0_i32, %c0_i32_0 : i32, i32
  }
  func.func @transform_2(%arg0: i32) -> (i32, i32) {
    %c0_i32 = arith.constant 0 : i32
    %c0_i32_0 = arith.constant 0 : i32
    %c0_i32_1 = arith.constant 0 : i32
    return %c0_i32, %c0_i32_0 : i32, i32
  }
  func.func @transform_3(%arg0: i32) -> (i32, i32) {
    %c0_i32 = arith.constant 0 : i32
    %c0_i32_0 = arith.constant 0 : i32
    %c0_i32_1 = arith.constant 0 : i32
    return %c0_i32, %c0_i32_0 : i32, i32
  }
  func.func @transform_4(%arg0: i32) -> (i32, i32) {
    %c0_i32 = arith.constant 0 : i32
    %c0_i32_0 = arith.constant 0 : i32
    %c0_i32_1 = arith.constant 0 : i32
    return %c0_i32, %c0_i32_0 : i32, i32
  }
  func.func @transform_5(%arg0: i32) -> (i32, i32) {
    %c0_i32 = arith.constant 0 : i32
    %c0_i32_0 = arith.constant 0 : i32
    %c0_i32_1 = arith.constant 0 : i32
    return %c0_i32, %c0_i32_0 : i32, i32
  }
  func.func @transform_6(%arg0: i32) -> (i32, i32) {
    %c0_i32 = arith.constant 0 : i32
    %c0_i32_0 = arith.constant 0 : i32
    %c0_i32_1 = arith.constant 0 : i32
    return %c0_i32, %c0_i32_0 : i32, i32
  }
  func.func @transform_7(%arg0: i32) -> i32 {
    %c0_i32 = arith.constant 0 : i32
    %c0_i32_0 = arith.constant 0 : i32
    return %c0_i32 : i32
  }
  func.func @transform_8(%arg0: i32) -> (i32, i32, i32) {
    %c0_i32 = arith.constant 0 : i32
    %c0_i32_0 = arith.constant 0 : i32
    %c0_i32_1 = arith.constant 0 : i32
    return %arg0, %c0_i32, %c0_i32_0 : i32, i32, i32
  }
}

</mosaic_0001>

<bundles_post_ra>
// kernel: tpu_custom_call.1
= control target key start
LH: loop header
LB: loop body
LE: loop exit
PB: predicated region body
PF: predicated region fallthrough
CT: control target
= control target key end

     0   :  { %s2296_s29 = smov 0   ;;  %s2832_s0 = inlined_call_operand.vmem [shape: f32[4,32,8], index: 0, kind: input, shape index: {}]   ;;  %s2833_s1 = inlined_call_operand.vmem [shape: f32[32,64], index: 1, kind: input, shape index: {}]   ;;  %s2834_s2 = inlined_call_operand.vmem [shape: f32[2,32], index: 2, kind: input, shape index: {}]   ;;  %s2835_s3 = inlined_call_operand.vmem [shape: f32[32,128], index: 3, kind: input, shape index: {}]   ;;  %s2836_s4 = inlined_call_operand.vmem [shape: f32[1,128], index: 4, kind: input, shape index: {}]   ;;  %s2837_s5 = inlined_call_operand.vmem [shape: f32[128,32], index: 5, kind: input, shape index: {}]   ;;  %s2838_s6 = inlined_call_operand.vmem [shape: f32[5,32], index: 6, kind: input, shape index: {}]   ;;  %s2839_s7 = inlined_call_operand.<no memory space> [shape: f32[1], index: 7, kind: input, shape index: {}]   ;;  %s2840_s8 = inlined_call_operand.vmem [shape: f32[4,32,8], index: 8, kind: output, shape index: {}]  }
   0x1   :  { %13 = sst [smem:[#allocation2]] %s2839_s7 }
   0x2 LB: > { %s1986_s30 = sadd.s32 4294967295, %s2241_s29   ;;  %p1990_p0 = scmp.ge.s32.totalorder %s2241_s29, 1  ;;  %s2241_s29 = sphi %s2296_s29, %s19_s29  }
   0x3   : > { %p265_p1 = scmp.lt.s32.totalorder %s2241_s29, 3 }
   0x5   : > { %p266_p2 = pnand %p1990_p0, %p265_p1 }
   0x6   : > { %s1991_s9 = sshll.u32 (!%p266_p2), %s1986_s30, 1  ;;  %s2244_s21 = smov (!%p266_p2), 96  }
   0x7   : > { %269 = sbr.rel (%p266_p2) target bundleno = 2635 (0xa4b), region = 52  ;;  %p302_p3 = scmp.lt.s32.totalorder (!%p266_p2), %s1991_s9, 3 }
   0x8   : > { %s475_s26 = sld [smem:[#allocation2]] (!%p266_p2) }
   0xc   : > { %v390_v0 = vld [vmem:[%s2833_s1 + $0x18] sm:$0xff]  ;;  %v389_v1 = vld [vmem:[%s2833_s1 + $0x10] sm:$0xff]  ;;  %v388_v2 = vld [vmem:[%s2833_s1 + $0x8] sm:$0xff]  ;;  %s2842_s9 = smov (!%p302_p3, %s1991_s9), 3  ;;  %v2243_v8 = vmov 0.0   ;;  %vm391_vm0 = vcmask 261120   ;;  %v488_v19 = vlaneseq }
   0xd   : > { %2049 = vmatprep.subr.mxu1 %v390_v0  ;;  %v387_v3 = vld [vmem:[%s2833_s1] sm:$0xff]  ;;  %s2013_s17 = sshll.u32 %s2842_s9, 5  ;;  %v2245_v17 = vmov 1966171168   ;;  %vm869_vm1 = vcmask 1041409   ;;  %vm871_vm2 = vcmask 1042434  }
   0xe   : > { %2050 = vmatpush3.msra.mxu1 %v390_v0  ;;  %s306_s20 = scalar_lea.vmem %s2832_s0, %s2013_s17  ;;  %v486_v18 = vunpack.c.l.s4 %v2245_v17  ;;  %v2336_v21 = vshrl.u32 %v488_v19, 7  ;;  %v1999_v22 = vld [vmem:[%s2834_s2] ss:$0 sm:$0xff]  ;;  %vm873_vm3 = vcmask 1043459   ;;  %vm875_vm4 = vcmask 1044484  }
   0xf   : > { %2051 = vmatprep.subr.mxu1 %v389_v1  ;;  %v315_v4 = vld [vmem:[%s306_s20] sm:$0xff]  ;;  %v316_v6 = vld [vmem:[%s306_s20 + $0x8] sm:$0xff]  ;;  %v317_v9 = vld [vmem:[%s306_s20 + $0x10] sm:$0xff]  ;;  %vm877_vm5 = vcmask 1045509   ;;  %vm879_vm6 = vcmask 1046534   ;;  %vm881_vm7 = vcmask 1047559  }
  0x10   : > { %2052 = vmatpush3.msra.mxu1 %v389_v1  ;;  %v319_v5 = vld [vmem:[%s306_s20 + $0x20] sm:$0xff]  ;;  %323 = vxpose.xlu0.b32.start [1/4] (short) (narrow) %v315_v4, 8  ;;  %v320_v7 = vld [vmem:[%s306_s20 + $0x28] sm:$0xff]  ;;  %v321_v10 = vld [vmem:[%s306_s20 + $0x30] sm:$0xff]  ;;  %v487_v20 = vunpack.c.0.s8 %v486_v18  ;;  %v2350_v36 = vsub.s32 0, %v2336_v21  ;;  %vm892_vm8 = vcmask 64512  }
  0x11   : > { %2053 = vmatprep.subr.mxu1 %v388_v2  ;;  %355 = vxpose.xlu1.b32.start [1/4] (short) (narrow) %v319_v5, 8  ;;  %v318_v11 = vld [vmem:[%s306_s20 + $0x18] sm:$0xff]  ;;  %vm2247_vm9 = vmmov 0  }
  0x12   : > { %2054 = vmatpush3.msra.mxu1 %v388_v2  ;;  %v322_v12 = vld [vmem:[%s306_s20 + $0x38] sm:$0xff]  ;;  %v2342_v24 = vsub.s32 %v487_v20, %v2336_v21 }
  0x13   : > { %2055 = vmatprep.subr.mxu1 %v387_v3 }
  0x14   : > { %2056 = vmatpush3.msra.mxu1 %v387_v3  ;;  %324 = vxpose.xlu0.b32.cont [2/4] (short) (narrow) %v316_v6, 8 }
  0x15   : > { %2060 = vmatprep.subr.mxu1 %v2243_v8  ;;  %356 = vxpose.xlu1.b32.cont [2/4] (short) (narrow) %v320_v7, 8 }
  0x18   : > { %325 = vxpose.xlu0.b32.cont [3/4] (short) (narrow) %v317_v9, 8 }
  0x19   : > { %357 = vxpose.xlu1.b32.cont [3/4] (short) (narrow) %v321_v10, 8 }
  0x1c   : > { %326 = vxpose.xlu0.b32.end [4/4] (short) (narrow) %v318_v11, 8 }
  0x1d   : > { %358 = vxpose.xlu1.b32.end [4/4] (short) (narrow) %v322_v12, 8  ;;  %v2380_v12 = vld [vmem:[%s2834_s2 + $0x1] ss:$0 sm:$0xff] }
  0x8c   : > { %v2325_v13 = vpop.trf.xlu0 }
  0x8d   : > { %v2327_v14 = vpop.trf.xlu1  ;;  %2057 = vmatprep.mubr.msk.f32.mxu1 %vm391_vm0, %v2325_v13 }
  0x8e   : > { %2058 = vmatmul.mubr.msk.f32.vlgmr.msra.gmra.mxu1 %vm391_vm0, %v2327_v14 }
  0x8f   : > { %2061 = vmatpush3.msra.mxu1 %v2325_v13  ;;  %2062 = vmatprep.mubr.msk.f32.mxu1 %vm2247_vm9, %v2243_v8 }
  0x90   : > { %2065 = vmatprep.subr.mxu1 %v2243_v8 }
 0x14e   : > { %v2059_v15 = vpop.f32.mrf.mxu1 }
 0x14f   : > { %666 = vrot.lane.b32.xlu1 %v2059_v15, %s2244_s21  ;;  %v481_v23 = vadd.f32 %v2059_v15, %v1999_v22 }
 0x150   : > { %v464_v16 = vpop.f32.mrf.mxu1 }
 0x151   : > { %664 = vrot.lane.b32.xlu0 %v464_v16, %s2244_s21  ;;  %v540_v25 = vrot.slane %v481_v23, %v2342_v24  ;;  %v480_v26 = vadd.f32 %v1999_v22, %v464_v16  ;;  %v533_v27 = vcombine.high %v481_v23, %v481_v23  ;;  %s313_s21 = scalar_lea.vmem %s2840_s8, %s2013_s17 }
 0x153   : > { %v548_v28 = vcombine.high %v540_v25, %v540_v25  ;;  %v491_v29 = vrot.slane %v480_v26, %v2342_v24  ;;  %v556_v30 = vrot.slane %v540_v25, %v2342_v24  ;;  %v547_v31 = vrot.slane %v533_v27, %v2342_v24 }
 0x154   : > { %v484_v33 = vcombine.high %v480_v26, %v480_v26 }
 0x155   : > { %v570_v32 = vrot.slane %v548_v28, %v2342_v24  ;;  %v499_v34 = vcombine.high %v491_v29, %v491_v29  ;;  %v578_v35 = vcombine.high %v556_v30, %v556_v30  ;;  %v563_v37 = vrot.slane %v547_v31, %v2342_v24 }
 0x156   : > { %v498_v39 = vrot.slane %v484_v33, %v2342_v24  ;;  %v617_v41 = vrot.slane %v556_v30, %v2350_v36  ;;  %v507_v45 = vrot.slane %v491_v29, %v2342_v24  ;;  %v549_v7 = vcombine.high %v547_v31, %v547_v31 }
 0x157   : > { %v580_v38 = vcombine.high %v570_v32, %v570_v32  ;;  %v521_v40 = vrot.slane %v499_v34, %v2342_v24  ;;  %v621_v42 = vrot.slane %v570_v32, %v2350_v36  ;;  %v625_v43 = vrot.slane %v578_v35, %v2350_v36 }
 0x158   : > { %v633_v44 = vrot.slane %v563_v37, %v2350_v36  ;;  %v500_v51 = vcombine.high %v498_v39, %v498_v39  ;;  %v514_v52 = vrot.slane %v498_v39, %v2342_v24  ;;  %v529_v58 = vcombine.high %v507_v45, %v507_v45 }
 0x159   : > { %v629_v47 = vrot.slane %v580_v38, %v2350_v36  ;;  %v589_v53 = vrot.slane %v521_v40, %v2350_v36  ;;  %v585_v59 = vrot.slane %v507_v45, %v2350_v36  ;;  %v531_v1 = vcombine.high %v521_v40, %v521_v40 }
 0x15a   : > { %v528_v60 = vrot.slane %v500_v51, %v2342_v24  ;;  %v530_v61 = vcombine.high %v514_v52, %v514_v52  ;;  %v601_v62 = vrot.slane %v514_v52, %v2350_v36  ;;  %v593_v2 = vrot.slane %v529_v58, %v2350_v36 }
 0x15b   : > { %v597_v9 = vrot.slane %v531_v1, %v2350_v36  ;;  %v579_v10 = vcombine.high %v563_v37, %v563_v37  ;;  %v577_v20 = vrot.slane %v549_v7, %v2342_v24 }
 0x15c   : > { %v532_v3 = vcombine.high %v528_v60, %v528_v60  ;;  %v609_v4 = vrot.slane %v530_v61, %v2350_v36  ;;  %v605_v22 = vrot.slane %v528_v60, %v2350_v36 }
 0x15d   : > { %v641_v26 = vrot.slane %v579_v10, %v2350_v36  ;;  %v581_v37 = vcombine.high %v577_v20, %v577_v20  ;;  %v637_v38 = vrot.slane %v577_v20, %v2350_v36 }
 0x15e   : > { %v613_v11 = vrot.slane %v532_v3, %v2350_v36 }
 0x1c1   : > { %v2360_v46 = vpop.permute.xlu1 %666 }
 0x1c2   : > { %v679_v48 = vadd.f32 %v2360_v46, %v621_v42  ;;  %v678_v49 = vadd.f32 %v2360_v46, %v617_v41  ;;  %v680_v50 = vadd.f32 %v2360_v46, %v625_v43  ;;  %v682_v55 = vadd.f32 %v2360_v46, %v633_v44 }
 0x1c3   : > { %v665_v54 = vpop.permute.xlu0 %664  ;;  %v681_v56 = vadd.f32 %v2360_v46, %v629_v47  ;;  %v684_v34 = vadd.f32 %v2360_v46, %v641_v26  ;;  %v683_v41 = vadd.f32 %v2360_v46, %v637_v38  ;;  %v645_v47 = vrot.slane %v581_v37, %v2350_v36 }
 0x1c4   : > { %2131 = vtanh.f32 %v679_v48  ;;  %v671_v57 = vadd.f32 %v665_v54, %v589_v53  ;;  %v670_v63 = vadd.f32 %v665_v54, %v585_v59  ;;  %v674_v0 = vadd.f32 %v665_v54, %v601_v62 }
 0x1c5   : > { %2133 = vtanh.f32 %v678_v49  ;;  %v672_v5 = vadd.f32 %v665_v54, %v593_v2  ;;  %v676_v6 = vadd.f32 %v665_v54, %v609_v4  ;;  %v673_v15 = vadd.f32 %v665_v54, %v597_v9 }
 0x1c6   : > { %2135 = vtanh.f32 %v680_v50  ;;  %v677_v17 = vadd.f32 %v665_v54, %v613_v11  ;;  %v675_v31 = vadd.f32 %v665_v54, %v605_v22  ;;  %v685_v50 = vadd.f32 %v2360_v46, %v645_v47 }
 0x1c7   : > { %2137 = vtanh.f32 %v682_v55 }
 0x1c8   : > { %2139 = vtanh.f32 %v681_v56 }
 0x1c9   : > { %2141 = vtanh.f32 %v671_v57 }
 0x1ca   : > { %2143 = vtanh.f32 %v670_v63 }
 0x1cb   : > { %2145 = vtanh.f32 %v674_v0 }
 0x1cc   : > { %2147 = vtanh.f32 %v672_v5 }
 0x1cd   : > { %2149 = vtanh.f32 %v676_v6 }
 0x1ce   : > { %2151 = vtanh.f32 %v673_v15 }
 0x1cf   : > { %2153 = vtanh.f32 %v677_v17 }
 0x1d0   : > { %2155 = vtanh.f32 %v675_v31 }
 0x1d1   : > { %v2132_v16 = vpop.eup %2131  ;;  %2157 = vtanh.f32 %v684_v34 }
 0x1d2   : > { %v2134_v18 = vpop.eup %2133  ;;  %v715_v23 = vmul.f32 %v2132_v16, %v2380_v12  ;;  %2159 = vtanh.f32 %v683_v41 }
 0x1d3   : > { %v2136_v25 = vpop.eup %2135  ;;  %v714_v27 = vmul.f32 %v2134_v18, %v2380_v12  ;;  %2161 = vtanh.f32 %v685_v50 }
 0x1d4   : > { %v2138_v28 = vpop.eup %2137  ;;  %v749_v29 = vsel %vm391_vm0, %v715_v23, 0.0  ;;  %v716_v30 = vmul.f32 %v2136_v25, %v2380_v12 }
 0x1d5   : > { %v2140_v32 = vpop.eup %2139  ;;  %750 = vadd.xlane.f32.xlu1 %v749_v29  ;;  %v746_v24 = vsel %vm391_vm0, %v714_v27, 0.0  ;;  %v718_v33 = vmul.f32 %v2138_v28, %v2380_v12  ;;  %v804_v28 = vand.u32 127, %v488_v19 }
 0x1d6   : > { %v2142_v35 = vpop.eup %2141  ;;  %747 = vadd.xlane.f32.xlu0 %v746_v24  ;;  %v752_v39 = vsel %vm391_vm0, %v716_v30, 0.0  ;;  %v717_v40 = vmul.f32 %v2140_v32, %v2380_v12  ;;  %v770_v30 = vstv %s475_s26 }
 0x1d7   : > { %v2144_v42 = vpop.eup %2143  ;;  %v758_v43 = vsel %vm391_vm0, %v718_v33, 0.0  ;;  %v707_v44 = vmul.f32 %v2142_v35, %v2380_v12 }
 0x1d8   : > { %v2146_v45 = vpop.eup %2145  ;;  %v755_v48 = vsel %vm391_vm0, %v717_v40, 0.0  ;;  %v706_v49 = vmul.f32 %v2144_v42, %v2380_v12 }
 0x1d9   : > { %753 = vadd.xlane.f32.xlu1 %v752_v39  ;;  %v2148_v51 = vpop.eup %2147  ;;  %v725_v52 = vsel %vm391_vm0, %v707_v44, 0.0  ;;  %v710_v53 = vmul.f32 %v2146_v45, %v2380_v12 }
 0x1da   : > { %759 = vadd.xlane.f32.xlu0 %v758_v43  ;;  %v2150_v54 = vpop.eup %2149  ;;  %v722_v55 = vsel %vm391_vm0, %v706_v49, 0.0  ;;  %v708_v56 = vmul.f32 %v2148_v51, %v2380_v12 }
 0x1db   : > { %v2152_v57 = vpop.eup %2151  ;;  %v734_v58 = vsel %vm391_vm0, %v710_v53, 0.0  ;;  %v712_v59 = vmul.f32 %v2150_v54, %v2380_v12 }
 0x1dc   : > { %v2154_v46 = vpop.eup %2153  ;;  %v728_v60 = vsel %vm391_vm0, %v708_v56, 0.0  ;;  %v709_v61 = vmul.f32 %v2152_v57, %v2380_v12 }
 0x1dd   : > { %756 = vadd.xlane.f32.xlu1 %v755_v48  ;;  %v2156_v62 = vpop.eup %2155  ;;  %v740_v63 = vsel %vm391_vm0, %v712_v59, 0.0  ;;  %v713_v0 = vmul.f32 %v2154_v46, %v2380_v12 }
 0x1de   : > { %726 = vadd.xlane.f32.xlu0 %v725_v52  ;;  %v2158_v1 = vpop.eup %2157  ;;  %v731_v2 = vsel %vm391_vm0, %v709_v61, 0.0  ;;  %v711_v3 = vmul.f32 %v2156_v62, %v2380_v12 }
 0x1df   : > { %v2160_v4 = vpop.eup %2159  ;;  %v743_v5 = vsel %vm391_vm0, %v713_v0, 0.0  ;;  %v720_v6 = vmul.f32 %v2158_v1, %v2380_v12 }
 0x1e0   : > { %v737_v7 = vsel %vm391_vm0, %v711_v3, 0.0  ;;  %v719_v9 = vmul.f32 %v2160_v4, %v2380_v12  ;;  %v2162_v10 = vpop.eup %2161 }
 0x1e1   : > { %723 = vadd.xlane.f32.xlu1 %v722_v55  ;;  %v764_v11 = vsel %vm391_vm0, %v720_v6, 0.0  ;;  %v721_v16 = vmul.f32 %v2162_v10, %v2380_v12  ;;  %v2426_v12 = vsub.s32 %v804_v28, %v2336_v21 }
 0x1e2   : > { %735 = vadd.xlane.f32.xlu0 %v734_v58  ;;  %v761_v15 = vsel %vm391_vm0, %v719_v9, 0.0 }
 0x1e3   : > { %v767_v17 = vsel %vm391_vm0, %v721_v16, 0.0 }
 0x1e5   : > { %729 = vadd.xlane.f32.xlu1 %v728_v60 }
 0x1e6   : > { %741 = vadd.xlane.f32.xlu0 %v740_v63 }
 0x1e9   : > { %732 = vadd.xlane.f32.xlu1 %v731_v2 }
 0x1ea   : > { %744 = vadd.xlane.f32.xlu0 %v743_v5 }
 0x1ed   : > { %738 = vadd.xlane.f32.xlu1 %v737_v7 }
 0x1ee   : > { %765 = vadd.xlane.f32.xlu0 %v764_v11 }
 0x1f1   : > { %762 = vadd.xlane.f32.xlu1 %v761_v15 }
 0x1f5   : > { %768 = vadd.xlane.f32.xlu1 %v767_v17 }
 0x25e   : > { %v751_v18 = vpop.xlane.xlu1 %750 }
 0x25f   : > { %v748_v20 = vpop.xlane.xlu0 %747  ;;  %v2432_v35 = vadd.f32 %v770_v30, %v751_v18 }
 0x260   : > { %v2434_v37 = vadd.f32 %v770_v30, %v748_v20 }
 0x261   : > { %v844_v47 = vrot.slane %v2432_v35, %v2426_v12 }
 0x262   : > { %v754_v22 = vpop.xlane.xlu1 %753  ;;  %v840_v48 = vrot.slane %v2434_v37, %v2426_v12 }
 0x263   : > { %v760_v23 = vpop.xlane.xlu0 %759  ;;  %v2438_v38 = vadd.f32 %v770_v30, %v754_v22 }
 0x264   : > { %v783_v59 = vadd.f32 %v770_v30, %v760_v23  ;;  %v883_v60 = vsel %vm869_vm1, %v844_v47, %v840_v48 }
 0x265   : > { %v848_v51 = vrot.slane %v2438_v38, %v2426_v12 }
 0x266   : > { %v757_v25 = vpop.xlane.xlu1 %756  ;;  %v856_v7 = vrot.slane %v783_v59, %v2426_v12 }
 0x267   : > { %v727_v26 = vpop.xlane.xlu0 %726  ;;  %v2442_v41 = vadd.f32 %v770_v30, %v757_v25  ;;  %v884_v63 = vsel %vm871_vm2, %v848_v51, %v883_v60  ;;  %v2530_v60 = vsub.s32 5, %v2336_v21 }
 0x268   : > { %v2428_v24 = vadd.f32 %v770_v30, %v727_v26 }
 0x269   : > { %v852_v55 = vrot.slane %v2442_v41, %v2426_v12 }
 0x26a   : > { %v724_v27 = vpop.xlane.xlu1 %723  ;;  %v812_v42 = vrot.slane %v2428_v24, %v2426_v12 }
 0x26b   : > { %v736_v29 = vpop.xlane.xlu0 %735  ;;  %v2423_v31 = vadd.f32 %v770_v30, %v724_v27  ;;  %v885_v3 = vsel %vm873_vm3, %v852_v55, %v884_v63 }
 0x26c   : > { %v2448_v45 = vadd.f32 %v770_v30, %v736_v29  ;;  %v886_v18 = vsel %vm875_vm4, %v856_v7, %v885_v3  ;;  %v2246_v29 = vmov 0  }
 0x26d   : > { %v808_v19 = vrot.slane %v2423_v31, %v2426_v12  ;;  %2129 = vset.pattern.permute.xlu1 %v2246_v29  ;;  %2130 = vset.pattern.permute.xlu0 %v2246_v29 }
 0x26e   : > { %v730_v32 = vpop.xlane.xlu1 %729  ;;  %v824_v46 = vrot.slane %v2448_v45, %v2426_v12 }
 0x26f   : > { %v2430_v33 = vadd.f32 %v770_v30, %v730_v32  ;;  %v742_v34 = vpop.xlane.xlu0 %741  ;;  %v870_v49 = vsel %vm869_vm1, %v812_v42, %v808_v19  ;;  %v2501_v32 = vsub.s32 2, %v2336_v21 }
 0x270   : > { %v2460_v53 = vadd.f32 %v770_v30, %v742_v34 }
 0x271   : > { %v816_v39 = vrot.slane %v2430_v33, %v2426_v12 }
 0x272   : > { %v733_v40 = vpop.xlane.xlu1 %732  ;;  %v832_v0 = vrot.slane %v2460_v53, %v2426_v12 }
 0x273   : > { %v2446_v43 = vadd.f32 %v770_v30, %v733_v40  ;;  %v745_v44 = vpop.xlane.xlu0 %744  ;;  %v872_v52 = vsel %vm871_vm2, %v816_v39, %v870_v49  ;;  %v2520_v49 = vsub.s32 3, %v2336_v21 }
 0x274   : > { %v2465_v57 = vadd.f32 %v770_v30, %v745_v44  ;;  %v2514_v44 = vsub.s32 4, %v2336_v21 }
 0x275   : > { %v820_v50 = vrot.slane %v2446_v43, %v2426_v12 }
 0x276   : > { %v739_v54 = vpop.xlane.xlu1 %738  ;;  %v836_v4 = vrot.slane %v2465_v57, %v2426_v12 }
 0x277   : > { %v874_v56 = vsel %vm873_vm3, %v820_v50, %v872_v52  ;;  %v2467_v58 = vadd.f32 %v770_v30, %v739_v54  ;;  %v766_v62 = vpop.xlane.xlu0 %765 }
 0x278   : > { %v876_v2 = vsel %vm875_vm4, %v824_v46, %v874_v56  ;;  %v2483_v9 = vadd.f32 %v770_v30, %v766_v62 }
 0x279   : > { %v828_v61 = vrot.slane %v2467_v58, %v2426_v12 }
 0x27a   : > { %v763_v1 = vpop.xlane.xlu1 %762  ;;  %v864_v23 = vrot.slane %v2483_v9, %v2426_v12 }
 0x27b   : > { %v784_v5 = vadd.f32 %v770_v30, %v763_v1  ;;  %v878_v6 = vsel %vm877_vm5, %v828_v61, %v876_v2 }
 0x27c   : > { %v880_v10 = vsel %vm879_vm6, %v832_v0, %v878_v6 }
 0x27d   : > { %v860_v11 = vrot.slane %v784_v5, %v2426_v12  ;;  %v882_v15 = vsel %vm881_vm7, %v836_v4, %v880_v10 }
 0x27e   : > { %v769_v16 = vpop.xlane.xlu1 %768  ;;  %v893_v17 = vsel %vm892_vm8, %v882_v15, -inf }
 0x27f   : > { %v786_v20 = vadd.f32 %v770_v30, %v769_v16  ;;  %894 = vmax.xlane.f32.xlu0 %v893_v17  ;;  %v887_v22 = vsel %vm877_vm5, %v860_v11, %v886_v18  ;;  %v2498_v30 = vsub.s32 1, %v2336_v21 }
 0x280   : > { %v888_v26 = vsel %vm879_vm6, %v864_v23, %v887_v22 }
 0x281   : > { %v868_v25 = vrot.slane %v786_v20, %v2426_v12 }
 0x283   : > { %v889_v27 = vsel %vm881_vm7, %v868_v25, %v888_v26 }
 0x284   : > { %v896_v28 = vsel %vm892_vm8, %v889_v27, -inf }
 0x285   : > { %897 = vmax.xlane.f32.xlu1 %v896_v28 }
 0x308   : > { %v2503_v34 = vpop.xlane.xlu0 %894 }
 0x309   : > { %v904_v47 = vrot.slane %v2503_v34, %v2350_v36  ;;  %v912_v0 = vrot.slane %v2503_v34, %v2501_v32 }
 0x30b   : > { %v981_v54 = vsub.f32 %v2423_v31, %v904_v47  ;;  %v983_v6 = vsub.f32 %v2430_v33, %v912_v0  ;;  %v2557_v33 = vsub.s32 6, %v2336_v21 }
 0x30d   : > { %v997_v63 = vmul.f32 1.442695, %v981_v54  ;;  %v1001_v16 = vmul.f32 1.442695, %v983_v6 }
 0x30e   : > { %v2505_v19 = vpop.xlane.xlu1 %897 }
 0x30f   : > { %v936_v39 = vrot.slane %v2505_v19, %v2350_v36  ;;  %v940_v40 = vrot.slane %v2505_v19, %v2498_v30  ;;  %v944_v42 = vrot.slane %v2505_v19, %v2501_v32  ;;  %v952_v50 = vrot.slane %v2505_v19, %v2514_v44 }
 0x310   : > { %v948_v55 = vrot.slane %v2505_v19, %v2520_v49 }
 0x311   : > { %v989_v48 = vsub.f32 %v2434_v37, %v936_v39  ;;  %v990_v51 = vsub.f32 %v2432_v35, %v940_v40  ;;  %v991_v52 = vsub.f32 %v2438_v38, %v944_v42  ;;  %v908_v37 = vrot.slane %v2503_v34, %v2498_v30 }
 0x312   : > { %v993_v61 = vsub.f32 %v783_v59, %v952_v50  ;;  %v956_v35 = vrot.slane %v2505_v19, %v2530_v60  ;;  %v992_v31 = vsub.f32 %v2442_v41, %v948_v55  ;;  %v2538_v38 = vsub.s32 7, %v2336_v21 }
 0x313   : > { %v1013_v56 = vmul.f32 1.442695, %v989_v48  ;;  %v1017_v46 = vmul.f32 1.442695, %v991_v52  ;;  %v1015_v62 = vmul.f32 1.442695, %v990_v51  ;;  %v982_v1 = vsub.f32 %v2428_v24, %v908_v37 }
 0x314   : > { %v1021_v2 = vmul.f32 1.442695, %v993_v61  ;;  %v964_v59 = vrot.slane %v2505_v19, %v2538_v38  ;;  %v994_v3 = vsub.f32 %v784_v5, %v956_v35  ;;  %v1019_v4 = vmul.f32 1.442695, %v992_v31 }
 0x315   : > { %2163 = vpow2.f32 %v1013_v56  ;;  %v916_v41 = vrot.slane %v2503_v34, %v2520_v49  ;;  %v999_v7 = vmul.f32 1.442695, %v982_v1  ;;  %v920_v24 = vrot.slane %v2503_v34, %v2514_v44 }
 0x316   : > { %2165 = vpow2.f32 %v1017_v46  ;;  %v996_v10 = vsub.f32 %v786_v20, %v964_v59  ;;  %v1023_v11 = vmul.f32 1.442695, %v994_v3  ;;  %v924_v20 = vrot.slane %v2503_v34, %v2530_v60 }
 0x317   : > { %2167 = vpow2.f32 %v1015_v62  ;;  %v984_v15 = vsub.f32 %v2446_v43, %v916_v41  ;;  %v985_v22 = vsub.f32 %v2448_v45, %v920_v24  ;;  %v928_v21 = vrot.slane %v2503_v34, %v2557_v33 }
 0x318   : > { %2169 = vpow2.f32 %v997_v63  ;;  %v1027_v5 = vmul.f32 1.442695, %v996_v10  ;;  %v986_v26 = vsub.f32 %v2467_v58, %v924_v20  ;;  %v932_v29 = vrot.slane %v2503_v34, %v2538_v38 }
 0x319   : > { %2171 = vpow2.f32 %v1021_v2  ;;  %v1003_v43 = vmul.f32 1.442695, %v984_v15  ;;  %v1005_v27 = vmul.f32 1.442695, %v985_v22  ;;  %v987_v39 = vsub.f32 %v2460_v53, %v928_v21 }
 0x31a   : > { %2173 = vpow2.f32 %v1019_v4  ;;  %v1007_v40 = vmul.f32 1.442695, %v986_v26  ;;  %v988_v47 = vsub.f32 %v2465_v57, %v932_v29  ;;  %v960_v50 = vrot.slane %v2505_v19, %v2557_v33 }
 0x31b   : > { %2175 = vpow2.f32 %v999_v7  ;;  %v1009_v48 = vmul.f32 1.442695, %v987_v39 }
 0x31c   : > { %2177 = vpow2.f32 %v1023_v11  ;;  %v1011_v51 = vmul.f32 1.442695, %v988_v47  ;;  %v995_v52 = vsub.f32 %v2483_v9, %v960_v50 }
 0x31d   : > { %2179 = vpow2.f32 %v1001_v16 }
 0x31e   : > { %2181 = vpow2.f32 %v1027_v5  ;;  %v1025_v19 = vmul.f32 1.442695, %v995_v52 }
 0x31f   : > { %2183 = vpow2.f32 %v1003_v43 }
 0x320   : > { %2185 = vpow2.f32 %v1005_v27 }
 0x321   : > { %2187 = vpow2.f32 %v1007_v40 }
 0x322   : > { %v2551_v17 = vpop.eup %2163  ;;  %2189 = vpow2.f32 %v1009_v48 }
 0x323   : > { %1070 = vperm.xlu1 %2129, %v2551_v17   ;;  %v2554_v18 = vpop.eup %2165  ;;  %2191 = vpow2.f32 %v1011_v51 }
 0x324   : > { %1076 = vperm.xlu0 %2130, %v2554_v18   ;;  %v2563_v23 = vpop.eup %2167  ;;  %2193 = vpow2.f32 %v1025_v19 }
 0x325   : > { %v2566_v25 = vpop.eup %2169 }
 0x326   : > { %v2572_v45 = vpop.eup %2171 }
 0x327   : > { %1073 = vperm.xlu1 %2129, %v2563_v23   ;;  %v2575_v28 = vpop.eup %2173 }
 0x328   : > { %1046 = vperm.xlu0 %2130, %v2566_v25   ;;  %v2581_v58 = vpop.eup %2175 }
 0x329   : > { %v2584_v42 = vpop.eup %2177 }
 0x32a   : > { %v2590_v53 = vpop.eup %2179 }
 0x32b   : > { %1082 = vperm.xlu1 %2129, %v2572_v45   ;;  %v2593_v34 = vpop.eup %2181 }
 0x32c   : > { %1079 = vperm.xlu0 %2130, %v2575_v28   ;;  %v2597_v57 = vpop.eup %2183 }
 0x32d   : > { %v2600_v54 = vpop.eup %2185 }
 0x32e   : > { %v2603_v55 = vpop.eup %2187 }
 0x32f   : > { %1049 = vperm.xlu1 %2129, %v2581_v58   ;;  %v2606_v56 = vpop.eup %2189 }
 0x330   : > { %1085 = vperm.xlu0 %2130, %v2584_v42   ;;  %v2609_v9 = vpop.eup %2191 }
 0x331   : > { %v2612_v46 = vpop.eup %2193 }
 0x333   : > { %1052 = vperm.xlu1 %2129, %v2590_v53  }
 0x334   : > { %1091 = vperm.xlu0 %2130, %v2593_v34  }
 0x337   : > { %1055 = vperm.xlu1 %2129, %v2597_v57  }
 0x33b   : > { %1058 = vperm.xlu1 %2129, %v2600_v54  }
 0x33f   : > { %1061 = vperm.xlu1 %2129, %v2603_v55  }
 0x343   : > { %1064 = vperm.xlu1 %2129, %v2606_v56  }
 0x347   : > { %1067 = vperm.xlu1 %2129, %v2609_v9  }
 0x34b   : > { %1088 = vperm.xlu1 %2129, %v2612_v46  }
 0x39e   : > { %v1071_v37 = vpop.permute.xlu1 %1070 }
 0x39f   : > { %v1077_v35 = vpop.permute.xlu0 %1076  ;;  %v1128_v11 = vrot.slane %v1071_v37, %v2426_v12 }
 0x3a0   : > { %v1136_v27 = vrot.slane %v1077_v35, %v2426_v12 }
 0x3a2   : > { %v1074_v61 = vpop.permute.xlu1 %1073 }
 0x3a3   : > { %v1047_v1 = vpop.permute.xlu0 %1046  ;;  %v1132_v41 = vrot.slane %v1074_v61, %v2426_v12 }
 0x3a4   : > { %v1096_v7 = vrot.slane %v1047_v1, %v2426_v12 }
 0x3a5   : > { %v1164_v22 = vsel %vm869_vm1, %v1132_v41, %v1128_v11 }
 0x3a6   : > { %v1083_v62 = vpop.permute.xlu1 %1082  ;;  %v1165_v48 = vsel %vm871_vm2, %v1136_v27, %v1164_v22 }
 0x3a7   : > { %v1080_v59 = vpop.permute.xlu0 %1079  ;;  %v1144_v47 = vrot.slane %v1083_v62, %v2426_v12 }
 0x3a8   : > { %v1140_v43 = vrot.slane %v1080_v59, %v2426_v12 }
 0x3aa   : > { %v1050_v63 = vpop.permute.xlu1 %1049  ;;  %v1166_v52 = vsel %vm873_vm3, %v1140_v43, %v1165_v48 }
 0x3ab   : > { %v1100_v4 = vrot.slane %v1050_v63, %v2426_v12  ;;  %v1086_v5 = vpop.permute.xlu0 %1085  ;;  %v1167_v62 = vsel %vm875_vm4, %v1144_v47, %v1166_v52 }
 0x3ac   : > { %v1148_v19 = vrot.slane %v1086_v5, %v2426_v12 }
 0x3ad   : > { %v1157_v16 = vsel %vm869_vm1, %v1100_v4, %v1096_v7 }
 0x3ae   : > { %v1053_v31 = vpop.permute.xlu1 %1052  ;;  %v1168_v1 = vsel %vm877_vm5, %v1148_v19, %v1167_v62 }
 0x3af   : > { %v1104_v6 = vrot.slane %v1053_v31, %v2426_v12  ;;  %v1092_v61 = vpop.permute.xlu0 %1091 }
 0x3b1   : > { %v1158_v21 = vsel %vm871_vm2, %v1104_v6, %v1157_v16 }
 0x3b2   : > { %v1056_v0 = vpop.permute.xlu1 %1055 }
 0x3b3   : > { %v1108_v10 = vrot.slane %v1056_v0, %v2426_v12 }
 0x3b5   : > { %v1159_v29 = vsel %vm873_vm3, %v1108_v10, %v1158_v21 }
 0x3b6   : > { %v1059_v2 = vpop.permute.xlu1 %1058 }
 0x3b7   : > { %v1112_v24 = vrot.slane %v1059_v2, %v2426_v12  ;;  %v1156_v2 = vrot.slane %v1092_v61, %v2426_v12 }
 0x3b9   : > { %v1160_v39 = vsel %vm875_vm4, %v1112_v24, %v1159_v29 }
 0x3ba   : > { %v1062_v3 = vpop.permute.xlu1 %1061 }
 0x3bb   : > { %v1116_v20 = vrot.slane %v1062_v3, %v2426_v12 }
 0x3bd   : > { %v1161_v50 = vsel %vm877_vm5, %v1116_v20, %v1160_v39 }
 0x3be   : > { %v1065_v15 = vpop.permute.xlu1 %1064 }
 0x3bf   : > { %v1120_v26 = vrot.slane %v1065_v15, %v2426_v12 }
 0x3c1   : > { %v1162_v37 = vsel %vm879_vm6, %v1120_v26, %v1161_v50 }
 0x3c2   : > { %v1068_v40 = vpop.permute.xlu1 %1067 }
 0x3c3   : > { %v1124_v51 = vrot.slane %v1068_v40, %v2426_v12 }
 0x3c5   : > { %v1163_v63 = vsel %vm881_vm7, %v1124_v51, %v1162_v37 }
 0x3c6   : > { %v1089_v35 = vpop.permute.xlu1 %1088  ;;  %v1173_v31 = vsel %vm892_vm8, %v1163_v63, 0.0 }
 0x3c7   : > { %v1152_v0 = vrot.slane %v1089_v35, %v2426_v12  ;;  %1174 = vadd.xlane.f32.xlu1 %v1173_v31 }
 0x3c9   : > { %v1169_v59 = vsel %vm879_vm6, %v1152_v0, %v1168_v1 }
 0x3ca   : > { %v1170_v3 = vsel %vm881_vm7, %v1156_v2, %v1169_v59 }
 0x3cb   : > { %v1176_v4 = vsel %vm892_vm8, %v1170_v3, 0.0 }
 0x3cc   : > { %1177 = vadd.xlane.f32.xlu0 %v1176_v4 }
 0x450   : > { %v1175_v6 = vpop.xlane.xlu1 %1174 }
 0x451   : > { %v1179_v15 = vadd.f32 1e-05, %v1175_v6 }
 0x453   : > { %v1190_v20 = vrot.slane %v1179_v15, %v2498_v30  ;;  %v1186_v22 = vrot.slane %v1179_v15, %v2350_v36  ;;  %v1194_v43 = vrot.slane %v1179_v15, %v2501_v32  ;;  %v1198_v21 = vrot.slane %v1179_v15, %v2520_v49 }
 0x454   : > { %v1202_v26 = vrot.slane %v1179_v15, %v2514_v44  ;;  %v1206_v40 = vrot.slane %v1179_v15, %v2530_v60  ;;  %v1214_v50 = vrot.slane %v1179_v15, %v2538_v38 }
 0x455   : > { %v1178_v41 = vpop.xlane.xlu0 %1177 }
 0x456   : > { %v1180_v7 = vadd.f32 1e-05, %v1178_v41 }
 0x458   : > { %v1222_v10 = vrot.slane %v1180_v7, %v2498_v30  ;;  %v1218_v11 = vrot.slane %v1180_v7, %v2350_v36  ;;  %v1226_v24 = vrot.slane %v1180_v7, %v2501_v32  ;;  %v1234_v16 = vrot.slane %v1180_v7, %v2514_v44 }
 0x459   : > { %v1230_v5 = vrot.slane %v1180_v7, %v2520_v49  ;;  %v1210_v36 = vrot.slane %v1179_v15, %v2557_v33  ;;  %v1238_v44 = vrot.slane %v1180_v7, %v2530_v60  ;;  %v1246_v52 = vrot.slane %v1180_v7, %v2538_v38 }
 0x45a   : > { %2195 = vrcp.f32 %v1222_v10  ;;  %v1242_v60 = vrot.slane %v1180_v7, %v2557_v33 }
 0x45b   : > { %2197 = vrcp.f32 %v1218_v11 }
 0x45c   : > { %2199 = vrcp.f32 %v1226_v24 }
 0x45d   : > { %2201 = vrcp.f32 %v1234_v16 }
 0x45e   : > { %2203 = vrcp.f32 %v1230_v5 }
 0x45f   : > { %2205 = vrcp.f32 %v1190_v20 }
 0x460   : > { %2207 = vrcp.f32 %v1186_v22 }
 0x461   : > { %2209 = vrcp.f32 %v1194_v43 }
 0x462   : > { %2211 = vrcp.f32 %v1198_v21 }
 0x463   : > { %2213 = vrcp.f32 %v1202_v26 }
 0x464   : > { %2215 = vrcp.f32 %v1206_v40 }
 0x465   : > { %2217 = vrcp.f32 %v1210_v36 }
 0x466   : > { %2219 = vrcp.f32 %v1238_v44 }
 0x467   : > { %v2196_v27 = vpop.eup %2195  ;;  %2221 = vrcp.f32 %v1214_v50 }
 0x468   : > { %v2198_v29 = vpop.eup %2197  ;;  %v1282_v39 = vmul.f32 %v2196_v27, %v2563_v23  ;;  %2223 = vrcp.f32 %v1246_v52 }
 0x469   : > { %v2200_v30 = vpop.eup %2199  ;;  %v1280_v47 = vmul.f32 %v2198_v29, %v2551_v17  ;;  %2225 = vrcp.f32 %v1242_v60 }
 0x46a   : > { %v2202_v32 = vpop.eup %2201  ;;  %1450 = vperm.xlu0 %2130, %v1282_v39   ;;  %v1284_v49 = vmul.f32 %v2200_v30, %v2554_v18 }
 0x46b   : > { %1447 = vperm.xlu1 %2129, %v1280_v47   ;;  %v2204_v48 = vpop.eup %2203  ;;  %v1288_v23 = vmul.f32 %v2202_v32, %v2572_v45 }
 0x46c   : > { %v2206_v51 = vpop.eup %2205  ;;  %v1286_v17 = vmul.f32 %v2204_v48, %v2575_v28 }
 0x46d   : > { %v2208_v19 = vpop.eup %2207  ;;  %v1266_v18 = vmul.f32 %v2206_v51, %v2581_v58 }
 0x46e   : > { %1453 = vperm.xlu0 %2130, %v1284_v49   ;;  %v2210_v37 = vpop.eup %2209  ;;  %v1264_v45 = vmul.f32 %v2208_v19, %v2566_v25 }
 0x46f   : > { %1459 = vperm.xlu1 %2129, %v1288_v23   ;;  %v2212_v61 = vpop.eup %2211  ;;  %v1268_v63 = vmul.f32 %v2210_v37, %v2590_v53 }
 0x470   : > { %v2214_v28 = vpop.eup %2213  ;;  %v1270_v38 = vmul.f32 %v2212_v61, %v2597_v57 }
 0x471   : > { %v2216_v35 = vpop.eup %2215  ;;  %v1272_v58 = vmul.f32 %v2214_v28, %v2600_v54 }
 0x472   : > { %1456 = vperm.xlu0 %2130, %v1286_v17   ;;  %v2218_v31 = vpop.eup %2217  ;;  %v1274_v33 = vmul.f32 %v2216_v35, %v2603_v55 }
 0x473   : > { %1307 = vperm.xlu1 %2129, %v1266_v18   ;;  %v2220_v62 = vpop.eup %2219  ;;  %v1276_v25 = vmul.f32 %v2218_v31, %v2606_v56 }
 0x474   : > { %v2222_v0 = vpop.eup %2221  ;;  %v1290_v53 = vmul.f32 %v2220_v62, %v2584_v42 }
 0x475   : > { %v2224_v1 = vpop.eup %2223  ;;  %v1278_v2 = vmul.f32 %v2222_v0, %v2609_v9 }
 0x476   : > { %1304 = vperm.xlu0 %2130, %v1264_v45   ;;  %v2226_v57 = vpop.eup %2225  ;;  %v1294_v54 = vmul.f32 %v2224_v1, %v2593_v34 }
 0x477   : > { %1310 = vperm.xlu1 %2129, %v1268_v63   ;;  %v1292_v55 = vmul.f32 %v2226_v57, %v2612_v46 }
 0x47a   : > { %1313 = vperm.xlu0 %2130, %v1270_v38  }
 0x47b   : > { %1316 = vperm.xlu1 %2129, %v1272_v58  }
 0x47e   : > { %1319 = vperm.xlu0 %2130, %v1274_v33  }
 0x47f   : > { %1322 = vperm.xlu1 %2129, %v1276_v25  }
 0x482   : > { %1462 = vperm.xlu0 %2130, %v1290_v53  }
 0x483   : > { %1325 = vperm.xlu1 %2129, %v1278_v2  }
 0x486   : > { %1468 = vperm.xlu0 %2130, %v1294_v54  }
 0x487   : > { %1465 = vperm.xlu1 %2129, %v1292_v55  }
 0x4e5   : > { %v1451_v56 = vpop.permute.xlu0 %1450 }
 0x4e6   : > { %v1448_v59 = vpop.permute.xlu1 %1447  ;;  %v1477_v43 = vrot.slane %v1451_v56, %v2426_v12  ;;  %v1630_v56 = vld [vmem:[%s2835_s3 + $0x18] sm:$0xff] }
 0x4e7   : > { %v1473_v21 = vrot.slane %v1448_v59, %v2426_v12  ;;  %v1629_v59 = vld [vmem:[%s2835_s3 + $0x10] sm:$0xff] }
 0x4e9   : > { %v1454_v3 = vpop.permute.xlu0 %1453  ;;  %v1502_v32 = vsel %vm869_vm1, %v1477_v43, %v1473_v21 }
 0x4ea   : > { %v1460_v42 = vpop.permute.xlu1 %1459  ;;  %v1481_v29 = vrot.slane %v1454_v3, %v2426_v12  ;;  %v1628_v3 = vld [vmem:[%s2835_s3 + $0x8] sm:$0xff] }
 0x4eb   : > { %v1489_v17 = vrot.slane %v1460_v42, %v2426_v12  ;;  %v1627_v42 = vld [vmem:[%s2835_s3] sm:$0xff] }
 0x4ec   : > { %v1503_v44 = vsel %vm871_vm2, %v1481_v29, %v1502_v32  ;;  %v2003_v29 = vld [vmem:[%s2838_s6] ss:$0 sm:$0xff] }
 0x4ed   : > { %v1457_v4 = vpop.permute.xlu0 %1456 }
 0x4ee   : > { %v1308_v41 = vpop.permute.xlu1 %1307  ;;  %v1485_v39 = vrot.slane %v1457_v4, %v2426_v12  ;;  %v1736_v4 = vld [vmem:[%s2837_s5 + $0x78] sm:$0xff] }
 0x4ef   : > { %v1334_v10 = vrot.slane %v1308_v41, %v2426_v12  ;;  %v1735_v41 = vld [vmem:[%s2837_s5 + $0x70] sm:$0xff]  ;;  %2081 = vmatprep.subr.mxu0 %v1736_v4 }
 0x4f0   : > { %v1504_v23 = vsel %vm873_vm3, %v1485_v39, %v1503_v44  ;;  %2082 = vmatpush3.msra.mxu0 %v1736_v4 }
 0x4f1   : > { %v1305_v9 = vpop.permute.xlu0 %1304  ;;  %v1505_v37 = vsel %vm875_vm4, %v1489_v17, %v1504_v23  ;;  %2083 = vmatprep.subr.mxu0 %v1735_v41  ;;  %v1723_v23 = vld [vmem:[%s2837_s5 + $0x10] sm:$0xff]  ;;  %v2005_v17 = vld [vmem:[%s2836_s4] ss:$0 sm:$0xff] }
 0x4f2   : > { %v1330_v6 = vrot.slane %v1305_v9, %v2426_v12  ;;  %v1311_v7 = vpop.permute.xlu1 %1310  ;;  %v1734_v9 = vld [vmem:[%s2837_s5 + $0x68] sm:$0xff]  ;;  %2084 = vmatpush3.msra.mxu0 %v1735_v41  ;;  %v2009_v41 = vld [vmem:[%s2838_s6 + $0x2] ss:$0 sm:$0xff] }
 0x4f3   : > { %v1338_v11 = vrot.slane %v1311_v7, %v2426_v12  ;;  %2085 = vmatprep.subr.mxu0 %v1734_v9  ;;  %v1732_v7 = vld [vmem:[%s2837_s5 + $0x58] sm:$0xff] }
 0x4f4   : > { %v1359_v34 = vsel %vm869_vm1, %v1334_v10, %v1330_v6  ;;  %v1733_v6 = vld [vmem:[%s2837_s5 + $0x60] sm:$0xff]  ;;  %2086 = vmatpush3.msra.mxu0 %v1734_v9  ;;  %v1731_v10 = vld [vmem:[%s2837_s5 + $0x50] sm:$0xff] }
 0x4f5   : > { %v1314_v24 = vpop.permute.xlu0 %1313  ;;  %v1360_v16 = vsel %vm871_vm2, %v1338_v11, %v1359_v34  ;;  %2087 = vmatprep.subr.mxu0 %v1733_v6  ;;  %v1730_v11 = vld [vmem:[%s2837_s5 + $0x48] sm:$0xff]  ;;  %v1729_v34 = vld [vmem:[%s2837_s5 + $0x40] sm:$0xff] }
 0x4f6   : > { %v1342_v46 = vrot.slane %v1314_v24, %v2426_v12  ;;  %v1317_v15 = vpop.permute.xlu1 %1316  ;;  %2088 = vmatpush3.msra.mxu0 %v1733_v6  ;;  %v1728_v24 = vld [vmem:[%s2837_s5 + $0x38] sm:$0xff] }
 0x4f7   : > { %v1346_v5 = vrot.slane %v1317_v15, %v2426_v12  ;;  %2089 = vmatprep.subr.mxu0 %v1732_v7  ;;  %v1726_v15 = vld [vmem:[%s2837_s5 + $0x28] sm:$0xff] }
 0x4f8   : > { %v1361_v20 = vsel %vm873_vm3, %v1342_v46, %v1360_v16  ;;  %2090 = vmatpush3.msra.mxu0 %v1732_v7  ;;  %v1727_v46 = vld [vmem:[%s2837_s5 + $0x30] sm:$0xff]  ;;  %v1725_v16 = vld [vmem:[%s2837_s5 + $0x20] sm:$0xff] }
 0x4f9   : > { %v1320_v22 = vpop.permute.xlu0 %1319  ;;  %v1362_v40 = vsel %vm875_vm4, %v1346_v5, %v1361_v20  ;;  %2091 = vmatprep.subr.mxu0 %v1731_v10  ;;  %v2010_v7 = vld [vmem:[%s2838_s6 + $0x3] ss:$0 sm:$0xff] }
 0x4fa   : > { %v1350_v26 = vrot.slane %v1320_v22, %v2426_v12  ;;  %v1323_v27 = vpop.permute.xlu1 %1322  ;;  %2092 = vmatpush3.msra.mxu0 %v1731_v10 }
 0x4fb   : > { %v1354_v30 = vrot.slane %v1323_v27, %v2426_v12  ;;  %2093 = vmatprep.subr.mxu0 %v1730_v11 }
 0x4fc   : > { %v1363_v47 = vsel %vm877_vm5, %v1350_v26, %v1362_v40  ;;  %2094 = vmatpush3.msra.mxu0 %v1730_v11  ;;  %v2004_v40 = vld [vmem:[%s2838_s6 + $0x1] ss:$0 sm:$0xff] }
 0x4fd   : > { %v1463_v36 = vpop.permute.xlu0 %1462  ;;  %v1364_v50 = vsel %vm879_vm6, %v1354_v30, %v1363_v47  ;;  %2095 = vmatprep.subr.mxu0 %v1729_v34 }
 0x4fe   : > { %v1326_v49 = vpop.permute.xlu1 %1325  ;;  %v1493_v51 = vrot.slane %v1463_v36, %v2426_v12  ;;  %2096 = vmatpush3.msra.mxu0 %v1729_v34 }
 0x4ff   : > { %v1358_v48 = vrot.slane %v1326_v49, %v2426_v12  ;;  %2097 = vmatprep.subr.mxu0 %v1728_v24 }
 0x500   : > { %v1506_v61 = vsel %vm877_vm5, %v1493_v51, %v1505_v37  ;;  %2098 = vmatpush3.msra.mxu0 %v1728_v24  ;;  %v1721_v51 = vld [vmem:[%s2837_s5] sm:$0xff] }
 0x501   : > { %v1365_v52 = vsel %vm881_vm7, %v1358_v48, %v1364_v50  ;;  %v1469_v19 = vpop.permute.xlu0 %1468  ;;  %2099 = vmatprep.subr.mxu0 %v1727_v46  ;;  %v1724_v48 = vld [vmem:[%s2837_s5 + $0x18] sm:$0xff]  ;;  %v1722_v50 = vld [vmem:[%s2837_s5 + $0x8] sm:$0xff] }
 0x502   : > { %v1501_v18 = vrot.slane %v1469_v19, %v2426_v12  ;;  %2063 = vmatmul.mubr.msk.f32.vlgmr.msra.gmra.mxu1 %vm892_vm8, %v1365_v52  ;;  %v1466_v60 = vpop.permute.xlu1 %1465  ;;  %2100 = vmatpush3.msra.mxu0 %v1727_v46 }
 0x503   : > { %2066 = vmatpush3.msra.mxu1 %v2327_v14  ;;  %v1497_v45 = vrot.slane %v1466_v60, %v2426_v12  ;;  %2067 = vmatprep.mubr.msk.f32.mxu1 %vm2247_vm9, %v2243_v8 }
 0x504   : > { %2070 = vmatprep.subr.mxu1 %v1630_v56  ;;  %2101 = vmatprep.subr.mxu0 %v1726_v15 }
 0x505   : > { %v1507_v63 = vsel %vm879_vm6, %v1497_v45, %v1506_v61  ;;  %2102 = vmatpush3.msra.mxu0 %v1726_v15  ;;  %v2008_v61 = vld [vmem:[%s2838_s6 + $0x4] ss:$0 sm:$0xff] }
 0x506   : > { %v1508_v28 = vsel %vm881_vm7, %v1501_v18, %v1507_v63  ;;  %2103 = vmatprep.subr.mxu0 %v1725_v16 }
 0x507   : > { %2068 = vmatmul.mubr.msk.f32.vlgmr.msra.gmra.mxu1 %vm892_vm8, %v1508_v28  ;;  %2104 = vmatpush3.msra.mxu0 %v1725_v16 }
 0x508   : > { %2071 = vmatpush3.msra.mxu1 %v1630_v56  ;;  %2105 = vmatprep.subr.mxu0 %v1724_v48 }
 0x509   : > { %2072 = vmatprep.subr.mxu1 %v1629_v59  ;;  %2106 = vmatpush3.msra.mxu0 %v1724_v48 }
 0x50a   : > { %2073 = vmatpush3.msra.mxu1 %v1629_v59  ;;  %2107 = vmatprep.subr.mxu0 %v1723_v23 }
 0x50b   : > { %2074 = vmatprep.subr.mxu1 %v1628_v3  ;;  %2108 = vmatpush3.msra.mxu0 %v1723_v23 }
 0x50c   : > { %2075 = vmatpush3.msra.mxu1 %v1628_v3  ;;  %2109 = vmatprep.subr.mxu0 %v1722_v50 }
 0x50d   : > { %2076 = vmatprep.subr.mxu1 %v1627_v42  ;;  %2110 = vmatpush3.msra.mxu0 %v1722_v50 }
 0x50e   : > { %2077 = vmatpush3.msra.mxu1 %v1627_v42  ;;  %2111 = vmatprep.subr.mxu0 %v1721_v51 }
 0x50f   : > { %2112 = vmatpush3.msra.mxu0 %v1721_v51 }
 0x5c2   : > { %v1434_v38 = vpop.f32.mrf.mxu1 }
 0x5c3   : > { %v1586_v35 = vadd.f32 %v1434_v38, %v2325_v13 }
 0x5c4   : > { %v2064_v58 = vpop.f32.mrf.mxu1 }
 0x5c5   : > { %v1588_v31 = vsel %vm391_vm0, %v1586_v35, 0.0 }
 0x5c6   : > { %1589 = vadd.xlane.f32.xlu1 %v1588_v31 }
 0x5c7   : > { %v1577_v33 = vpop.f32.mrf.mxu1 }
 0x5c8   : > { %v1587_v12 = vadd.f32 %v1577_v33, %v2327_v14 }
 0x5c9   : > { %v2069_v62 = vpop.f32.mrf.mxu1 }
 0x5ca   : > { %v1591_v8 = vsel %vm391_vm0, %v1587_v12, 0.0 }
 0x5cb   : > { %1592 = vadd.xlane.f32.xlu0 %v1591_v8 }
 0x64f   : > { %v1590_v25 = vpop.xlane.xlu1 %1589 }
 0x650   : > { %v1595_v0 = vmul.f32 0.03125, %v1590_v25 }
 0x652   : > { %v2720_v53 = vsub.f32 %v1586_v35, %v1595_v0 }
 0x654   : > { %v1593_v1 = vpop.xlane.xlu0 %1592  ;;  %v1599_v2 = vmul.f32 %v2720_v53, %v2720_v53 }
 0x655   : > { %v1596_v13 = vmul.f32 0.03125, %v1593_v1 }
 0x656   : > { %v1601_v57 = vsel %vm391_vm0, %v1599_v2, 0.0 }
 0x657   : > { %v2725_v54 = vsub.f32 %v1587_v12, %v1596_v13  ;;  %1602 = vadd.xlane.f32.xlu0 %v1601_v57 }
 0x659   : > { %v1600_v14 = vmul.f32 %v2725_v54, %v2725_v54 }
 0x65b   : > { %v1604_v55 = vsel %vm391_vm0, %v1600_v14, 0.0 }
 0x65c   : > { %1605 = vadd.xlane.f32.xlu0 %v1604_v55 }
 0x6e0   : > { %v1603_v5 = vpop.xlane.xlu0 %1602 }
 0x6e1   : > { %v1607_v20 = vmul.f32 0.03125, %v1603_v5 }
 0x6e3   : > { %v1609_v22 = vadd.f32 1e-05, %v1607_v20 }
 0x6e5   : > { %2227 = vrsqrt.f32 %v1609_v22  ;;  %v1606_v43 = vpop.xlane.xlu0 %1605 }
 0x6e6   : > { %v1608_v21 = vmul.f32 0.03125, %v1606_v43 }
 0x6e8   : > { %v1610_v26 = vadd.f32 1e-05, %v1608_v21 }
 0x6ea   : > { %2229 = vrsqrt.f32 %v1610_v26 }
 0x6f2   : > { %v2228_v27 = vpop.eup %2227 }
 0x6f3   : > { %v1613_v39 = vmul.f32 %v2228_v27, %v2720_v53 }
 0x6f5   : > { %v1619_v30 = vmul.f32 %v2003_v29, %v1613_v39 }
 0x6f7   : > { %v2230_v47 = vpop.eup %2229  ;;  %v1625_v36 = vadd.f32 %v2004_v40, %v1619_v30 }
 0x6f8   : > { %v1614_v32 = vmul.f32 %v2230_v47, %v2725_v54 }
 0x6f9   : > { %2078 = vmatprep.mubr.msk.f32.mxu1 %vm391_vm0, %v1625_v36 }
 0x6fa   : > { %v1620_v49 = vmul.f32 %v2003_v29, %v1614_v32 }
 0x6fc   : > { %v1626_v44 = vadd.f32 %v2004_v40, %v1620_v49 }
 0x6fe   : > { %2079 = vmatmul.mubr.msk.f32.vlgmr.msra.gmra.mxu1 %vm391_vm0, %v1626_v44 }
 0x7be   : > { %v2080_v52 = vpop.f32.mrf.mxu1 }
 0x7bf   : > { %v1716_v19 = vadd.f32 %v2080_v52, %v2005_v17 }
 0x7c0   : > { %v1710_v18 = vpop.f32.mrf.mxu1 }
 0x7c1   : > { %v1711_v60 = vadd.f32 %v2005_v17, %v1710_v18  ;;  %v1720_v45 = vmax.f32 %v1716_v19, 0.0 }
 0x7c3   : > { %v1719_v37 = vmax.f32 %v1711_v60, 0.0 }
 0x7c5   : > { %2113 = vmatprep.mubr.f32.mxu0 %v1719_v37 }
 0x7c6   : > { %2114 = vmatmul.mubr.f32.vlgmr.msra.gmra.mxu0 %v1720_v45 }
 0x886   : > { %v2115_v63 = vpop.f32.mrf.mxu0 }
 0x887   : > { %v1813_v28 = vadd.f32 %v2115_v63, %v2008_v61 }
 0x888   : > { %v1807_v38 = vpop.f32.mrf.mxu0 }
 0x889   : > { %v1808_v35 = vadd.f32 %v2008_v61, %v1807_v38  ;;  %v1817_v58 = vadd.f32 %v1813_v28, %v1626_v44 }
 0x88b   : > { %v1821_v31 = vsel %vm391_vm0, %v1817_v58, 0.0  ;;  %v1816_v33 = vadd.f32 %v1808_v35, %v1625_v36 }
 0x88c   : > { %1822 = vadd.xlane.f32.xlu0 %v1821_v31 }
 0x88d   : > { %v1818_v12 = vsel %vm391_vm0, %v1816_v33, 0.0 }
 0x88e   : > { %1819 = vadd.xlane.f32.xlu1 %v1818_v12 }
 0x915   : > { %v1823_v62 = vpop.xlane.xlu0 %1822 }
 0x916   : > { %v1825_v8 = vmul.f32 0.03125, %v1823_v62 }
 0x917   : > { %v1820_v25 = vpop.xlane.xlu1 %1819 }
 0x918   : > { %v1827_v0 = vsub.f32 %v1817_v58, %v1825_v8  ;;  %v1824_v53 = vmul.f32 0.03125, %v1820_v25 }
 0x91a   : > { %v1826_v1 = vsub.f32 %v1816_v33, %v1824_v53  ;;  %v1829_v2 = vmul.f32 %v1827_v0, %v1827_v0 }
 0x91c   : > { %v1833_v13 = vsel %vm391_vm0, %v1829_v2, 0.0  ;;  %v1828_v57 = vmul.f32 %v1826_v1, %v1826_v1 }
 0x91d   : > { %1834 = vadd.xlane.f32.xlu0 %v1833_v13 }
 0x91e   : > { %v1830_v54 = vsel %vm391_vm0, %v1828_v57, 0.0 }
 0x91f   : > { %1831 = vadd.xlane.f32.xlu1 %v1830_v54 }
 0x9a6   : > { %v1835_v14 = vpop.xlane.xlu0 %1834 }
 0x9a7   : > { %v1837_v55 = vmul.f32 0.03125, %v1835_v14 }
 0x9a8   : > { %v1832_v56 = vpop.xlane.xlu1 %1831 }
 0x9a9   : > { %v1839_v59 = vadd.f32 1e-05, %v1837_v55  ;;  %v1836_v3 = vmul.f32 0.03125, %v1832_v56 }
 0x9ab   : > { %2231 = vrsqrt.f32 %v1839_v59  ;;  %v1838_v42 = vadd.f32 1e-05, %v1836_v3 }
 0x9ad   : > { %2233 = vrsqrt.f32 %v1838_v42 }
 0x9b8   : > { %v2232_v4 = vpop.eup %2231 }
 0x9b9   : > { %v1843_v9 = vmul.f32 %v2232_v4, %v1827_v0 }
 0x9ba   : > { %v2234_v6 = vpop.eup %2233 }
 0x9bb   : > { %v1849_v10 = vmul.f32 %v2009_v41, %v1843_v9  ;;  %v1842_v11 = vmul.f32 %v2234_v6, %v1826_v1 }
 0x9bd   : > { %v1855_v34 = vadd.f32 %v2010_v7, %v1849_v10  ;;  %v1848_v24 = vmul.f32 %v2009_v41, %v1842_v11 }
 0x9bf   : > { %1888 = vxpose.xlu0.b32.start.end [1/1] (short) (narrow) %v1855_v34, 32  ;;  %v1854_v46 = vadd.f32 %v2010_v7, %v1848_v24 }
 0x9c1   : > { %1856 = vxpose.xlu1.b32.start.end [1/1] (short) (narrow) %v1854_v46, 32 }
 0xa3b   : > { %v1904_v15 = vpop.trf.xlu0 }
 0xa3c   : > { %1924 = vst.msk [vmem:[%s313_s21 + $0x20] sm:$0xff] %vm892_vm8, %v1904_v15 }
 0xa3d   : > { %v1872_v16 = vpop.trf.xlu1 }
 0xa3e   : > { %1920 = vst.msk [vmem:[%s313_s21] sm:$0xff] %vm892_vm8, %v1872_v16 }
 0xa3f   : > { %v1905_v5 = vpop.trf.xlu0 }
 0xa40   : > { %1925 = vst.msk [vmem:[%s313_s21 + $0x28] sm:$0xff] %vm892_vm8, %v1905_v5 }
 0xa41   : > { %v1873_v20 = vpop.trf.xlu1 }
 0xa42   : > { %1921 = vst.msk [vmem:[%s313_s21 + $0x8] sm:$0xff] %vm892_vm8, %v1873_v20 }
 0xa43   : > { %v1906_v22 = vpop.trf.xlu0 }
 0xa44   : > { %1926 = vst.msk [vmem:[%s313_s21 + $0x30] sm:$0xff] %vm892_vm8, %v1906_v22 }
 0xa45   : > { %v1874_v43 = vpop.trf.xlu1 }
 0xa46   : > { %1922 = vst.msk [vmem:[%s313_s21 + $0x10] sm:$0xff] %vm892_vm8, %v1874_v43 }
 0xa47   : > { %v1907_v21 = vpop.trf.xlu0 }
 0xa48   : > { %1927 = vst.msk [vmem:[%s313_s21 + $0x38] sm:$0xff] %vm892_vm8, %v1907_v21 }
 0xa49   : > { %v1875_v26 = vpop.trf.xlu1 }
 0xa4a   : > { %1923 = vst.msk [vmem:[%s313_s21 + $0x18] sm:$0xff] %vm892_vm8, %v1875_v26 }
 0xa4b PF: > { %s19_s29 = sadd.s32 1, %s2241_s29  }
 0xa4c   : > { %p16_p4 = scmp.ge.s32.totalorder %s19_s29, 4  }
 0xa4e   :  { %18 = sbr.rel (!%p16_p4) target bundleno = 2 (0x2), region = 82 }

</bundles_post_ra>
